<compile_context>
chip_gen: v7x
topology: tpu7x:2x2x1
jax: 0.10.0
libtpu: 0.0.40
codegen_flags: <defaults>
</compile_context>

<pallas_src>
import functools
import math

import jax
import jax.numpy as jnp
from jax import lax
from jax.experimental import pallas as pl
from jax.experimental.pallas import tpu as pltpu

THRESHOLD = 1.0


def _round_up(x, m):
    return (x + m - 1) // m * m


def spiking_rnn_kernel(x_ref, w1_ref, b1_ref, w2_ref, b2_ref, wout_ref,
                       Lc_ref, decay_ref,
                       betas_ref, bout_ref,                       # SMEM scalars
                       out_ref,                                   # (Tc, TB) output block
                       cur1_ref, spk2_ref, mem1_ref, mem2_ref, mem_out_ref,
                       *, unroll):
    Tc, TB, I = x_ref.shape
    H = w1_ref.shape[1]

    beta1 = jnp.clip(betas_ref[0], 0.0, 1.0)
    beta2 = jnp.clip(betas_ref[1], 0.0, 1.0)
    bout = bout_ref[0]

    # LIF / leaky-output state persists across time chunks (grid axis 1, "arbitrary");
    # reset it at the first chunk of every batch block.
    @pl.when(pl.program_id(1) == 0)
    def _():
        mem1_ref[...] = jnp.zeros_like(mem1_ref)
        mem2_ref[...] = jnp.zeros_like(mem2_ref)
        mem_out_ref[...] = jnp.zeros_like(mem_out_ref)

    # ---- (1) Hoisted bf16 input projection for the whole chunk (off the serial path). ----
    x_all = x_ref[...].reshape(Tc * TB, I)
    cur1_all = jnp.dot(x_all, w1_ref[...], preferred_element_type=jnp.float32) + b1_ref[...]
    cur1_ref[...] = cur1_all.reshape(Tc, TB, H)

    w2 = w2_ref[...]            # (H, H) bf16 -- spikes are exact in bf16 -> bf16 MXU path
    b2 = b2_ref[...]            # (1, H) f32

    # ---- (2) Serial LIF recurrence: only spk1 @ W2 + elementwise updates per step. ----
    # Membrane state lives in VMEM scratch so the register file stays small at TB=128.
    def step(t, carry):
        cur1 = cur1_ref[t]                                        # (TB, H) leading-dim read
        mem1 = mem1_ref[...]
        reset1 = (mem1 > THRESHOLD).astype(jnp.float32)
        mem1 = beta1 * mem1 + cur1 - reset1 * THRESHOLD
        mem1_ref[...] = mem1
        spk1 = (mem1 > THRESHOLD).astype(jnp.bfloat16)
        cur2 = jnp.dot(spk1, w2, preferred_element_type=jnp.float32) + b2
        mem2 = mem2_ref[...]
        reset2 = (mem2 > THRESHOLD).astype(jnp.float32)
        mem2 = beta2 * mem2 + cur2 - reset2 * THRESHOLD
        mem2_ref[...] = mem2
        spk2_ref[t] = (mem2 > THRESHOLD).astype(jnp.bfloat16)     # chunk-local spike history
        return carry

    lax.fori_loop(0, Tc, step, 0, unroll=unroll)

    # ---- (3) Deferred fc_out + non-resetting leaky output neuron, amortized per chunk. ----
    #   out_s      = spk2_s . wout + bout
    #   mem_out_t  = beta_out^(t+1) * carry_in + sum_{s<=t} beta_out^(t-s) * out_s
    out_all = jnp.sum(spk2_ref[...].astype(jnp.float32) * wout_ref[...], axis=-1) + bout  # (Tc, TB)
    mem_out = (jnp.dot(Lc_ref[...], out_all, preferred_element_type=jnp.float32)
               + decay_ref[...] * mem_out_ref[...])               # (Tc,1)*(1,TB) broadcast
    out_ref[...] = mem_out
    mem_out_ref[...] = mem_out[Tc - 1:Tc, :]                      # carry for the next chunk


def spiking_rnn_forward(x, params):
    """x: (B, T, input_size) float32 -> (B, T, 1) float32."""
    B, T, I = x.shape
    H = params["w1"].shape[1]

    I_pad = _round_up(I, 128)                # lane-dense operands
    H_pad = _round_up(H, 128)

    # Batch blocking: fill the MXU M dimension (up to 128 rows per block); keep >= 2 blocks
    # when the batch is large enough so the "parallel" axis shards across v7x's 2 TCs.
    B_pad = _round_up(B, 8)
    n_blocks = -(-B_pad // 128)
    if n_blocks < 2 and B_pad >= 64:
        n_blocks = 2
    TB = _round_up(-(-B_pad // n_blocks), 8)
    B_pad = _round_up(B_pad, TB)
    nB = B_pad // TB

    # Time chunking: keep chunk-resident buffers (cur1 f32, spk2 bf16 history, epilogue f32
    # temp, double-buffered bf16 x block) inside a fixed VMEM budget -> VMEM is O(T_chunk).
    per_step_bytes = TB * (H_pad * 4 + H_pad * 2 + H_pad * 4 + 2 * I_pad * 2)
    budget = 16 * 1024 * 1024
    t_chunk = min(T, 256, max(8, budget // per_step_bytes))
    if t_chunk < T:
        t_chunk = max(8, (t_chunk // 8) * 8)         # chunked time blocks need sublane alignment
    T_pad = _round_up(T, t_chunk)
    nT = T_pad // t_chunk
    unroll = True if t_chunk <= 16 else 4            # moderate unroll for long chunks

    # Time-major, zero-padded, bf16 input: (T_pad, B_pad, I_pad).
    xt = jnp.transpose(x, (1, 0, 2)).astype(jnp.bfloat16)
    xt = jnp.pad(xt, ((0, T_pad - T), (0, B_pad - B), (0, I_pad - I)))

    # Zero-padded parameters (padded hidden units never spike: zero weight + zero bias).
    w1 = jnp.pad(params["w1"].astype(jnp.bfloat16), ((0, I_pad - I), (0, H_pad - H)))
    b1 = jnp.pad(params["b1"].reshape(1, H).astype(jnp.float32), ((0, 0), (0, H_pad - H)))
    w2 = jnp.pad(params["w2"].astype(jnp.bfloat16), ((0, H_pad - H), (0, H_pad - H)))
    b2 = jnp.pad(params["b2"].reshape(1, H).astype(jnp.float32), ((0, 0), (0, H_pad - H)))
    wout = jnp.pad(params["wout"].reshape(1, H).astype(jnp.float32), ((0, 0), (0, H_pad - H)))

    # Chunk-local lower-triangular beta_out-power matrix and the carry-in decay column:
    #   mem_out[t] = beta_out^(t+1) * carry + sum_{s<=t} beta_out^(t-s) * out[s]
    beta_out = jnp.clip(params["betas"][2].astype(jnp.float32), 0.0, 1.0)
    steps = jnp.arange(t_chunk, dtype=jnp.int32)
    diff = steps[:, None] - steps[None, :]
    pow_masked = jnp.where(diff >= 0, diff, 0).astype(jnp.float32)   # no 0 ** negative -> inf
    Lc = jnp.where(diff >= 0, beta_out ** pow_masked, 0.0).astype(jnp.float32)
    decay = (beta_out ** (steps.astype(jnp.float32) + 1.0)).reshape(t_chunk, 1)

    grid_spec = pltpu.PrefetchScalarGridSpec(
        num_scalar_prefetch=0,
        grid=(nB, nT),
        in_specs=[
            pl.BlockSpec((t_chunk, TB, I_pad), lambda i, j: (j, i, 0)),   # x time chunk
            pl.BlockSpec((I_pad, H_pad), lambda i, j: (0, 0)),            # w1 (bf16)
            pl.BlockSpec((1, H_pad), lambda i, j: (0, 0)),                # b1
            pl.BlockSpec((H_pad, H_pad), lambda i, j: (0, 0)),            # w2 (bf16)
            pl.BlockSpec((1, H_pad), lambda i, j: (0, 0)),                # b2
            pl.BlockSpec((1, H_pad), lambda i, j: (0, 0)),                # wout (row)
            pl.BlockSpec((t_chunk, t_chunk), lambda i, j: (0, 0)),        # Lc (beta_out powers)
            pl.BlockSpec((t_chunk, 1), lambda i, j: (0, 0)),              # decay column
            pl.BlockSpec(memory_space=pltpu.MemorySpace.SMEM),            # betas
            pl.BlockSpec(memory_space=pltpu.MemorySpace.SMEM),            # bout
        ],
        out_specs=pl.BlockSpec((None, t_chunk, TB), lambda i, j: (i, j, 0)),
        scratch_shapes=[
            pltpu.VMEM((t_chunk, TB, H_pad), jnp.float32),    # hoisted cur1 for the chunk
            pltpu.VMEM((t_chunk, TB, H_pad), jnp.bfloat16),   # chunk-local spk2 history
            pltpu.VMEM((TB, H_pad), jnp.float32),             # mem1 (persists across chunks)
            pltpu.VMEM((TB, H_pad), jnp.float32),             # mem2 (persists across chunks)
            pltpu.VMEM((1, TB), jnp.float32),                 # mem_out carry
        ],
    )

    out = pl.pallas_call(
        functools.partial(spiking_rnn_kernel, unroll=unroll),
        out_shape=jax.ShapeDtypeStruct((nB, T_pad, TB), jnp.float32),
        grid_spec=grid_spec,
        compiler_params=pltpu.CompilerParams(
            dimension_semantics=("parallel", "arbitrary"),
            vmem_limit_bytes=64 * 1024 * 1024,
        ),
    )(xt, w1, b1, w2, b2, wout, Lc, decay,
      params["betas"].astype(jnp.float32), params["bout"].astype(jnp.float32))

    # (nB, T_pad, TB) -> (B_pad, T_pad) -> (B, T, 1)   (wrapper-side layout plumbing only)
    out = jnp.transpose(out, (0, 2, 1)).reshape(B_pad, T_pad)[:B, :T]
    return out[:, :, None]


def init_params(key, input_size, hidden_size):
    """Deterministic init mimicking nn.Linear's U(-1/sqrt(fan_in), 1/sqrt(fan_in))."""
    ks = jax.random.split(key, 6)

    def linear(kw, kb, fan_in, fan_out):
        bound = 1.0 / math.sqrt(fan_in)
        w = jax.random.uniform(kw, (fan_in, fan_out), jnp.float32, -bound, bound)
        b = jax.random.uniform(kb, (fan_out,), jnp.float32, -bound, bound)
        return w, b

    w1, b1 = linear(ks[0], ks[1], input_size, hidden_size)
    w2, b2 = linear(ks[2], ks[3], hidden_size, hidden_size)
    wout, bout = linear(ks[4], ks[5], hidden_size, 1)
    return {
        # fc1 / fc2 weights stored bf16: binary spikes are exact in bf16, so both matmuls
        # run on the MXU bf16 path with f32 accumulation; the reference uses the same
        # bf16-rounded operands, so the semantics are shared.
        "w1": w1.astype(jnp.bfloat16), "b1": b1,
        "w2": w2.astype(jnp.bfloat16), "b2": b2,
        "wout": wout, "bout": bout,                              # (H, 1), (1,)
        "betas": jnp.array([0.9, 0.9, 0.9], jnp.float32),        # learn_beta=True, init 0.9
    }


def reference_forward(x, params):
    """Pure-JAX reference (sequential Python loop) for correctness checking.

    Uses the same bf16 matmul operands / f32 accumulation and the same exact-f32 fc_out
    reduction as the kernel so the comparison is not dominated by dtype differences."""
    B, T, _ = x.shape
    H = params["w1"].shape[1]
    wout_row = params["wout"].reshape(1, H).astype(jnp.float32)
    beta1, beta2, beta_out = [jnp.clip(params["betas"][i], 0.0, 1.0) for i in range(3)]
    mem1 = jnp.zeros((B, H), jnp.float32)
    mem2 = jnp.zeros((B, H), jnp.float32)
    mem_out = jnp.zeros((B, 1), jnp.float32)
    outs = []
    for t in range(T):
        cur1 = jnp.dot(x[:, t, :].astype(jnp.bfloat16), params["w1"],
                       preferred_element_type=jnp.float32) + params["b1"]
        r1 = (mem1 > THRESHOLD).astype(jnp.float32)
        mem1 = beta1 * mem1 + cur1 - r1 * THRESHOLD
        spk1 = (mem1 > THRESHOLD).astype(jnp.bfloat16)
        cur2 = jnp.dot(spk1, params["w2"],
                       preferred_element_type=jnp.float32) + params["b2"]
        r2 = (mem2 > THRESHOLD).astype(jnp.float32)
        mem2 = beta2 * mem2 + cur2 - r2 * THRESHOLD
        spk2 = (mem2 > THRESHOLD).astype(jnp.float32)
        out = jnp.sum(spk2 * wout_row, axis=-1, keepdims=True) + params["bout"]
        mem_out = beta_out * mem_out + out
        outs.append(mem_out)
    return jnp.stack(outs, axis=1)  # (B, T, 1)


if __name__ == "__main__":
    batch, num_steps, input_size, hidden_size = 2, 8, 16, 32

    key = jax.random.PRNGKey(0)
    k_x, k_p = jax.random.split(key)
    # Scale input up a bit so the LIF neurons actually spike.
    x = 2.0 * jax.random.normal(k_x, (batch, num_steps, input_size), jnp.float32)
    params = init_params(k_p, input_size, hidden_size)

    fwd = jax.jit(spiking_rnn_forward)
    y = jax.block_until_ready(fwd(x, params))

    y_ref = reference_forward(x, params)
    assert y.shape == (batch, num_steps, 1)
    assert jnp.allclose(y, y_ref, atol=1e-4, rtol=1e-4), "kernel mismatch vs reference"

    print("KERNEL_OK")
</pallas_src>

<mosaic_0001>
module attributes {stable_mosaic.version = 11 : i64} {
  func.func @spiking_rnn_kernel(%arg0: i32, %arg1: i32, %arg2: memref<8x8x128xbf16, #tpu.memory_space<vmem>>, %arg3: memref<128x128xbf16, #tpu.memory_space<vmem>>, %arg4: memref<1x128xf32, #tpu.memory_space<vmem>>, %arg5: memref<128x128xbf16, #tpu.memory_space<vmem>>, %arg6: memref<1x128xf32, #tpu.memory_space<vmem>>, %arg7: memref<1x128xf32, #tpu.memory_space<vmem>>, %arg8: memref<8x8xf32, #tpu.memory_space<vmem>>, %arg9: memref<8x1xf32, #tpu.memory_space<vmem>>, %arg10: memref<3xf32, #tpu.memory_space<smem>>, %arg11: memref<1xf32, #tpu.memory_space<smem>>, %arg12: memref<1x8x8xf32, #tpu.memory_space<vmem>>, %arg13: memref<8x8x128xf32, #tpu.memory_space<vmem>>, %arg14: memref<8x8x128xbf16, #tpu.memory_space<vmem>>, %arg15: memref<8x128xf32, #tpu.memory_space<vmem>>, %arg16: memref<8x128xf32, #tpu.memory_space<vmem>>, %arg17: memref<1x8xf32, #tpu.memory_space<vmem>>) attributes {dimension_semantics = [#tpu.dimension_semantics<parallel>, #tpu.dimension_semantics<arbitrary>], iteration_bounds = array<i64: 1, 1>, scalar_prefetch = 0 : i64, scratch_operands = 5 : i64, tpu.core_type = #tpu.core_type<tc>, window_params = [{transform_indices = @transform_0, window_bounds = array<i64: 8, 8, 128>}, {pipeline_mode = #tpu.pipeline_mode<synchronous>, transform_indices = @transform_1, window_bounds = array<i64: 128, 128>}, {pipeline_mode = #tpu.pipeline_mode<synchronous>, transform_indices = @transform_2, window_bounds = array<i64: 1, 128>}, {pipeline_mode = #tpu.pipeline_mode<synchronous>, transform_indices = @transform_3, window_bounds = array<i64: 128, 128>}, {pipeline_mode = #tpu.pipeline_mode<synchronous>, transform_indices = @transform_4, window_bounds = array<i64: 1, 128>}, {pipeline_mode = #tpu.pipeline_mode<synchronous>, transform_indices = @transform_5, window_bounds = array<i64: 1, 128>}, {pipeline_mode = #tpu.pipeline_mode<synchronous>, transform_indices = @transform_6, window_bounds = array<i64: 8, 8>}, {pipeline_mode = #tpu.pipeline_mode<synchronous>, transform_indices = @transform_7, window_bounds = array<i64: 8, 1>}, {transform_indices = @transform_8, window_bounds = array<i64: 3>}, {transform_indices = @transform_9, window_bounds = array<i64: 1>}, {transform_indices = @transform_10, window_bounds = array<i64: 1, 8, 8>}]} {
    %c0 = arith.constant 0 : index
    %0 = memref.load %arg10[%c0] : memref<3xf32, #tpu.memory_space<smem>>
    %cst = arith.constant 0.000000e+00 : f32
    %cst_0 = arith.constant 1.000000e+00 : f32
    %1 = arith.maximumf %cst, %0 : f32
    %2 = arith.minimumf %cst_0, %1 : f32
    %c1 = arith.constant 1 : index
    %3 = memref.load %arg10[%c1] : memref<3xf32, #tpu.memory_space<smem>>
    %cst_1 = arith.constant 0.000000e+00 : f32
    %cst_2 = arith.constant 1.000000e+00 : f32
    %4 = arith.maximumf %cst_1, %3 : f32
    %5 = arith.minimumf %cst_2, %4 : f32
    %c0_3 = arith.constant 0 : index
    %6 = memref.load %arg11[%c0_3] : memref<1xf32, #tpu.memory_space<smem>>
    %c0_i32 = arith.constant 0 : i32
    %7 = arith.cmpi eq, %arg1, %c0_i32 : i32
    %8 = arith.extui %7 : i1 to i32
    %c0_i32_4 = arith.constant 0 : i32
    %9 = arith.cmpi ne, %8, %c0_i32_4 : i32
    scf.if %9 {
      %cst_191 = arith.constant 0.000000e+00 : f32
      %395 = vector.broadcast %cst_191 : f32 to vector<8x128xf32>
      %c0_192 = arith.constant 0 : index
      %c0_193 = arith.constant 0 : index
      %396 = vector.load %arg15[%c0_192, %c0_193] : memref<8x128xf32, #tpu.memory_space<vmem>>, vector<8x128xf32>
      tpu.vector_store %arg15[%c0_192, %c0_193], %395 {strides = array<i32>} : memref<8x128xf32, #tpu.memory_space<vmem>>, vector<8x128xf32>,
      %cst_194 = arith.constant 0.000000e+00 : f32
      %397 = vector.broadcast %cst_194 : f32 to vector<8x128xf32>
      %c0_195 = arith.constant 0 : index
      %c0_196 = arith.constant 0 : index
      %398 = vector.load %arg16[%c0_195, %c0_196] : memref<8x128xf32, #tpu.memory_space<vmem>>, vector<8x128xf32>
      tpu.vector_store %arg16[%c0_195, %c0_196], %397 {strides = array<i32>} : memref<8x128xf32, #tpu.memory_space<vmem>>, vector<8x128xf32>,
      %cst_197 = arith.constant 0.000000e+00 : f32
      %399 = vector.broadcast %cst_197 : f32 to vector<1x8xf32>
      %c0_198 = arith.constant 0 : index
      %c0_199 = arith.constant 0 : index
      %400 = vector.load %arg17[%c0_198, %c0_199] : memref<1x8xf32, #tpu.memory_space<vmem>>, vector<1x8xf32>
      tpu.vector_store %arg17[%c0_198, %c0_199], %399 {strides = array<i32>} : memref<1x8xf32, #tpu.memory_space<vmem>>, vector<1x8xf32>,
    } else {
    }
    %c0_5 = arith.constant 0 : index
    %c0_6 = arith.constant 0 : index
    %c0_7 = arith.constant 0 : index
    %10 = vector.load %arg2[%c0_5, %c0_6, %c0_7] : memref<8x8x128xbf16, #tpu.memory_space<vmem>>, vector<8x8x128xbf16>
    %11 = vector.shape_cast %10 : vector<8x8x128xbf16> to vector<64x128xbf16>
    %c0_8 = arith.constant 0 : index
    %c0_9 = arith.constant 0 : index
    %12 = vector.load %arg3[%c0_8, %c0_9] : memref<128x128xbf16, #tpu.memory_space<vmem>>, vector<128x128xbf16>
    %cst_10 = arith.constant dense<0.000000e+00> : vector<64x128xf32>
    %13 = tpu.matmul %11, %12, %cst_10 {dimension_numbers = #tpu.dot_dimension_numbers<[1], [0], [0], [1], [0, 0, 1, 1], [], []>} : vector<64x128xbf16>, vector<128x128xbf16>, vector<64x128xf32> -> vector<64x128xf32>
    %c0_11 = arith.constant 0 : index
    %c0_12 = arith.constant 0 : index
    %14 = vector.load %arg4[%c0_11, %c0_12] : memref<1x128xf32, #tpu.memory_space<vmem>>, vector<1x128xf32>
    %15 = vector.broadcast %14 : vector<1x128xf32> to vector<64x128xf32>
    %16 = arith.addf %13, %15 : vector<64x128xf32>
    %17 = vector.shape_cast %16 : vector<64x128xf32> to vector<8x8x128xf32>
    %c0_13 = arith.constant 0 : index
    %c0_14 = arith.constant 0 : index
    %c0_15 = arith.constant 0 : index
    %18 = vector.load %arg13[%c0_13, %c0_14, %c0_15] : memref<8x8x128xf32, #tpu.memory_space<vmem>>, vector<8x8x128xf32>
    tpu.vector_store %arg13[%c0_13, %c0_14, %c0_15], %17 {strides = array<i32>} : memref<8x8x128xf32, #tpu.memory_space<vmem>>, vector<8x8x128xf32>,
    %c0_16 = arith.constant 0 : index
    %c0_17 = arith.constant 0 : index
    %19 = vector.load %arg5[%c0_16, %c0_17] : memref<128x128xbf16, #tpu.memory_space<vmem>>, vector<128x128xbf16>
    %c0_18 = arith.constant 0 : index
    %c0_19 = arith.constant 0 : index
    %20 = vector.load %arg6[%c0_18, %c0_19] : memref<1x128xf32, #tpu.memory_space<vmem>>, vector<1x128xf32>
    %c0_i32_20 = arith.constant 0 : i32
    %21 = arith.index_cast %c0_i32_20 : i32 to index
    %c0_21 = arith.constant 0 : index
    %c0_22 = arith.constant 0 : index
    %22 = vector.load %arg13[%21, %c0_21, %c0_22] : memref<8x8x128xf32, #tpu.memory_space<vmem>>, vector<1x8x128xf32>
    %23 = vector.shape_cast %22 : vector<1x8x128xf32> to vector<8x128xf32>
    %c0_23 = arith.constant 0 : index
    %c0_24 = arith.constant 0 : index
    %24 = vector.load %arg15[%c0_23, %c0_24] : memref<8x128xf32, #tpu.memory_space<vmem>>, vector<8x128xf32>
    %cst_25 = arith.constant 1.000000e+00 : f32
    %25 = vector.broadcast %cst_25 : f32 to vector<8x128xf32>
    %26 = arith.cmpf ogt, %24, %25 : vector<8x128xf32>
    %27 = arith.extui %26 : vector<8x128xi1> to vector<8x128xi32>
    %28 = arith.sitofp %27 : vector<8x128xi32> to vector<8x128xf32>
    %29 = vector.broadcast %2 : f32 to vector<8x128xf32>
    %30 = arith.mulf %29, %24 : vector<8x128xf32>
    %31 = arith.addf %30, %23 : vector<8x128xf32>
    %cst_26 = arith.constant 1.000000e+00 : f32
    %32 = vector.broadcast %cst_26 : f32 to vector<8x128xf32>
    %33 = arith.mulf %28, %32 : vector<8x128xf32>
    %34 = arith.subf %31, %33 : vector<8x128xf32>
    %c0_27 = arith.constant 0 : index
    %c0_28 = arith.constant 0 : index
    %35 = vector.load %arg15[%c0_27, %c0_28] : memref<8x128xf32, #tpu.memory_space<vmem>>, vector<8x128xf32>
    tpu.vector_store %arg15[%c0_27, %c0_28], %34 {strides = array<i32>} : memref<8x128xf32, #tpu.memory_space<vmem>>, vector<8x128xf32>,
    %cst_29 = arith.constant 1.000000e+00 : f32
    %36 = vector.broadcast %cst_29 : f32 to vector<8x128xf32>
    %37 = arith.cmpf ogt, %34, %36 : vector<8x128xf32>
    %38 = arith.extui %37 : vector<8x128xi1> to vector<8x128xi32>
    %39 = arith.sitofp %38 : vector<8x128xi32> to vector<8x128xf32>
    %40 = arith.truncf %39 : vector<8x128xf32> to vector<8x128xbf16>
    %cst_30 = arith.constant dense<0.000000e+00> : vector<8x128xf32>
    %41 = tpu.matmul %40, %19, %cst_30 {dimension_numbers = #tpu.dot_dimension_numbers<[1], [0], [0], [1], [0, 0, 1, 1], [], []>} : vector<8x128xbf16>, vector<128x128xbf16>, vector<8x128xf32> -> vector<8x128xf32>
    %42 = vector.broadcast %20 : vector<1x128xf32> to vector<8x128xf32>
    %43 = arith.addf %41, %42 : vector<8x128xf32>
    %c0_31 = arith.constant 0 : index
    %c0_32 = arith.constant 0 : index
    %44 = vector.load %arg16[%c0_31, %c0_32] : memref<8x128xf32, #tpu.memory_space<vmem>>, vector<8x128xf32>
    %cst_33 = arith.constant 1.000000e+00 : f32
    %45 = vector.broadcast %cst_33 : f32 to vector<8x128xf32>
    %46 = arith.cmpf ogt, %44, %45 : vector<8x128xf32>
    %47 = arith.extui %46 : vector<8x128xi1> to vector<8x128xi32>
    %48 = arith.sitofp %47 : vector<8x128xi32> to vector<8x128xf32>
    %49 = vector.broadcast %5 : f32 to vector<8x128xf32>
    %50 = arith.mulf %49, %44 : vector<8x128xf32>
    %51 = arith.addf %50, %43 : vector<8x128xf32>
    %cst_34 = arith.constant 1.000000e+00 : f32
    %52 = vector.broadcast %cst_34 : f32 to vector<8x128xf32>
    %53 = arith.mulf %48, %52 : vector<8x128xf32>
    %54 = arith.subf %51, %53 : vector<8x128xf32>
    %c0_35 = arith.constant 0 : index
    %c0_36 = arith.constant 0 : index
    %55 = vector.load %arg16[%c0_35, %c0_36] : memref<8x128xf32, #tpu.memory_space<vmem>>, vector<8x128xf32>
    tpu.vector_store %arg16[%c0_35, %c0_36], %54 {strides = array<i32>} : memref<8x128xf32, #tpu.memory_space<vmem>>, vector<8x128xf32>,
    %cst_37 = arith.constant 1.000000e+00 : f32
    %56 = vector.broadcast %cst_37 : f32 to vector<8x128xf32>
    %57 = arith.cmpf ogt, %54, %56 : vector<8x128xf32>
    %58 = arith.extui %57 : vector<8x128xi1> to vector<8x128xi32>
    %59 = arith.sitofp %58 : vector<8x128xi32> to vector<8x128xf32>
    %60 = arith.truncf %59 : vector<8x128xf32> to vector<8x128xbf16>
    %61 = arith.index_cast %c0_i32_20 : i32 to index
    %c0_38 = arith.constant 0 : index
    %c0_39 = arith.constant 0 : index
    %62 = vector.load %arg14[%61, %c0_38, %c0_39] : memref<8x8x128xbf16, #tpu.memory_space<vmem>>, vector<1x8x128xbf16>
    %63 = vector.shape_cast %62 : vector<1x8x128xbf16> to vector<8x128xbf16>
    %64 = vector.shape_cast %60 : vector<8x128xbf16> to vector<1x8x128xbf16>
    tpu.vector_store %arg14[%61, %c0_38, %c0_39], %64 {strides = array<i32>} : memref<8x8x128xbf16, #tpu.memory_space<vmem>>, vector<1x8x128xbf16>,
    %c1_i32 = arith.constant 1 : i32
    %65 = arith.index_cast %c1_i32 : i32 to index
    %c0_40 = arith.constant 0 : index
    %c0_41 = arith.constant 0 : index
    %66 = vector.load %arg13[%65, %c0_40, %c0_41] : memref<8x8x128xf32, #tpu.memory_space<vmem>>, vector<1x8x128xf32>
    %67 = vector.shape_cast %66 : vector<1x8x128xf32> to vector<8x128xf32>
    %c0_42 = arith.constant 0 : index
    %c0_43 = arith.constant 0 : index
    %68 = vector.load %arg15[%c0_42, %c0_43] : memref<8x128xf32, #tpu.memory_space<vmem>>, vector<8x128xf32>
    %cst_44 = arith.constant 1.000000e+00 : f32
    %69 = vector.broadcast %cst_44 : f32 to vector<8x128xf32>
    %70 = arith.cmpf ogt, %68, %69 : vector<8x128xf32>
    %71 = arith.extui %70 : vector<8x128xi1> to vector<8x128xi32>
    %72 = arith.sitofp %71 : vector<8x128xi32> to vector<8x128xf32>
    %73 = vector.broadcast %2 : f32 to vector<8x128xf32>
    %74 = arith.mulf %73, %68 : vector<8x128xf32>
    %75 = arith.addf %74, %67 : vector<8x128xf32>
    %cst_45 = arith.constant 1.000000e+00 : f32
    %76 = vector.broadcast %cst_45 : f32 to vector<8x128xf32>
    %77 = arith.mulf %72, %76 : vector<8x128xf32>
    %78 = arith.subf %75, %77 : vector<8x128xf32>
    %c0_46 = arith.constant 0 : index
    %c0_47 = arith.constant 0 : index
    %79 = vector.load %arg15[%c0_46, %c0_47] : memref<8x128xf32, #tpu.memory_space<vmem>>, vector<8x128xf32>
    tpu.vector_store %arg15[%c0_46, %c0_47], %78 {strides = array<i32>} : memref<8x128xf32, #tpu.memory_space<vmem>>, vector<8x128xf32>,
    %cst_48 = arith.constant 1.000000e+00 : f32
    %80 = vector.broadcast %cst_48 : f32 to vector<8x128xf32>
    %81 = arith.cmpf ogt, %78, %80 : vector<8x128xf32>
    %82 = arith.extui %81 : vector<8x128xi1> to vector<8x128xi32>
    %83 = arith.sitofp %82 : vector<8x128xi32> to vector<8x128xf32>
    %84 = arith.truncf %83 : vector<8x128xf32> to vector<8x128xbf16>
    %cst_49 = arith.constant dense<0.000000e+00> : vector<8x128xf32>
    %85 = tpu.matmul %84, %19, %cst_49 {dimension_numbers = #tpu.dot_dimension_numbers<[1], [0], [0], [1], [0, 0, 1, 1], [], []>} : vector<8x128xbf16>, vector<128x128xbf16>, vector<8x128xf32> -> vector<8x128xf32>
    %86 = vector.broadcast %20 : vector<1x128xf32> to vector<8x128xf32>
    %87 = arith.addf %85, %86 : vector<8x128xf32>
    %c0_50 = arith.constant 0 : index
    %c0_51 = arith.constant 0 : index
    %88 = vector.load %arg16[%c0_50, %c0_51] : memref<8x128xf32, #tpu.memory_space<vmem>>, vector<8x128xf32>
    %cst_52 = arith.constant 1.000000e+00 : f32
    %89 = vector.broadcast %cst_52 : f32 to vector<8x128xf32>
    %90 = arith.cmpf ogt, %88, %89 : vector<8x128xf32>
    %91 = arith.extui %90 : vector<8x128xi1> to vector<8x128xi32>
    %92 = arith.sitofp %91 : vector<8x128xi32> to vector<8x128xf32>
    %93 = vector.broadcast %5 : f32 to vector<8x128xf32>
    %94 = arith.mulf %93, %88 : vector<8x128xf32>
    %95 = arith.addf %94, %87 : vector<8x128xf32>
    %cst_53 = arith.constant 1.000000e+00 : f32
    %96 = vector.broadcast %cst_53 : f32 to vector<8x128xf32>
    %97 = arith.mulf %92, %96 : vector<8x128xf32>
    %98 = arith.subf %95, %97 : vector<8x128xf32>
    %c0_54 = arith.constant 0 : index
    %c0_55 = arith.constant 0 : index
    %99 = vector.load %arg16[%c0_54, %c0_55] : memref<8x128xf32, #tpu.memory_space<vmem>>, vector<8x128xf32>
    tpu.vector_store %arg16[%c0_54, %c0_55], %98 {strides = array<i32>} : memref<8x128xf32, #tpu.memory_space<vmem>>, vector<8x128xf32>,
    %cst_56 = arith.constant 1.000000e+00 : f32
    %100 = vector.broadcast %cst_56 : f32 to vector<8x128xf32>
    %101 = arith.cmpf ogt, %98, %100 : vector<8x128xf32>
    %102 = arith.extui %101 : vector<8x128xi1> to vector<8x128xi32>
    %103 = arith.sitofp %102 : vector<8x128xi32> to vector<8x128xf32>
    %104 = arith.truncf %103 : vector<8x128xf32> to vector<8x128xbf16>
    %105 = arith.index_cast %c1_i32 : i32 to index
    %c0_57 = arith.constant 0 : index
    %c0_58 = arith.constant 0 : index
    %106 = vector.load %arg14[%105, %c0_57, %c0_58] : memref<8x8x128xbf16, #tpu.memory_space<vmem>>, vector<1x8x128xbf16>
    %107 = vector.shape_cast %106 : vector<1x8x128xbf16> to vector<8x128xbf16>
    %108 = vector.shape_cast %104 : vector<8x128xbf16> to vector<1x8x128xbf16>
    tpu.vector_store %arg14[%105, %c0_57, %c0_58], %108 {strides = array<i32>} : memref<8x8x128xbf16, #tpu.memory_space<vmem>>, vector<1x8x128xbf16>,
    %c2_i32 = arith.constant 2 : i32
    %109 = arith.index_cast %c2_i32 : i32 to index
    %c0_59 = arith.constant 0 : index
    %c0_60 = arith.constant 0 : index
    %110 = vector.load %arg13[%109, %c0_59, %c0_60] : memref<8x8x128xf32, #tpu.memory_space<vmem>>, vector<1x8x128xf32>
    %111 = vector.shape_cast %110 : vector<1x8x128xf32> to vector<8x128xf32>
    %c0_61 = arith.constant 0 : index
    %c0_62 = arith.constant 0 : index
    %112 = vector.load %arg15[%c0_61, %c0_62] : memref<8x128xf32, #tpu.memory_space<vmem>>, vector<8x128xf32>
    %cst_63 = arith.constant 1.000000e+00 : f32
    %113 = vector.broadcast %cst_63 : f32 to vector<8x128xf32>
    %114 = arith.cmpf ogt, %112, %113 : vector<8x128xf32>
    %115 = arith.extui %114 : vector<8x128xi1> to vector<8x128xi32>
    %116 = arith.sitofp %115 : vector<8x128xi32> to vector<8x128xf32>
    %117 = vector.broadcast %2 : f32 to vector<8x128xf32>
    %118 = arith.mulf %117, %112 : vector<8x128xf32>
    %119 = arith.addf %118, %111 : vector<8x128xf32>
    %cst_64 = arith.constant 1.000000e+00 : f32
    %120 = vector.broadcast %cst_64 : f32 to vector<8x128xf32>
    %121 = arith.mulf %116, %120 : vector<8x128xf32>
    %122 = arith.subf %119, %121 : vector<8x128xf32>
    %c0_65 = arith.constant 0 : index
    %c0_66 = arith.constant 0 : index
    %123 = vector.load %arg15[%c0_65, %c0_66] : memref<8x128xf32, #tpu.memory_space<vmem>>, vector<8x128xf32>
    tpu.vector_store %arg15[%c0_65, %c0_66], %122 {strides = array<i32>} : memref<8x128xf32, #tpu.memory_space<vmem>>, vector<8x128xf32>,
    %cst_67 = arith.constant 1.000000e+00 : f32
    %124 = vector.broadcast %cst_67 : f32 to vector<8x128xf32>
    %125 = arith.cmpf ogt, %122, %124 : vector<8x128xf32>
    %126 = arith.extui %125 : vector<8x128xi1> to vector<8x128xi32>
    %127 = arith.sitofp %126 : vector<8x128xi32> to vector<8x128xf32>
    %128 = arith.truncf %127 : vector<8x128xf32> to vector<8x128xbf16>
    %cst_68 = arith.constant dense<0.000000e+00> : vector<8x128xf32>
    %129 = tpu.matmul %128, %19, %cst_68 {dimension_numbers = #tpu.dot_dimension_numbers<[1], [0], [0], [1], [0, 0, 1, 1], [], []>} : vector<8x128xbf16>, vector<128x128xbf16>, vector<8x128xf32> -> vector<8x128xf32>
    %130 = vector.broadcast %20 : vector<1x128xf32> to vector<8x128xf32>
    %131 = arith.addf %129, %130 : vector<8x128xf32>
    %c0_69 = arith.constant 0 : index
    %c0_70 = arith.constant 0 : index
    %132 = vector.load %arg16[%c0_69, %c0_70] : memref<8x128xf32, #tpu.memory_space<vmem>>, vector<8x128xf32>
    %cst_71 = arith.constant 1.000000e+00 : f32
    %133 = vector.broadcast %cst_71 : f32 to vector<8x128xf32>
    %134 = arith.cmpf ogt, %132, %133 : vector<8x128xf32>
    %135 = arith.extui %134 : vector<8x128xi1> to vector<8x128xi32>
    %136 = arith.sitofp %135 : vector<8x128xi32> to vector<8x128xf32>
    %137 = vector.broadcast %5 : f32 to vector<8x128xf32>
    %138 = arith.mulf %137, %132 : vector<8x128xf32>
    %139 = arith.addf %138, %131 : vector<8x128xf32>
    %cst_72 = arith.constant 1.000000e+00 : f32
    %140 = vector.broadcast %cst_72 : f32 to vector<8x128xf32>
    %141 = arith.mulf %136, %140 : vector<8x128xf32>
    %142 = arith.subf %139, %141 : vector<8x128xf32>
    %c0_73 = arith.constant 0 : index
    %c0_74 = arith.constant 0 : index
    %143 = vector.load %arg16[%c0_73, %c0_74] : memref<8x128xf32, #tpu.memory_space<vmem>>, vector<8x128xf32>
    tpu.vector_store %arg16[%c0_73, %c0_74], %142 {strides = array<i32>} : memref<8x128xf32, #tpu.memory_space<vmem>>, vector<8x128xf32>,
    %cst_75 = arith.constant 1.000000e+00 : f32
    %144 = vector.broadcast %cst_75 : f32 to vector<8x128xf32>
    %145 = arith.cmpf ogt, %142, %144 : vector<8x128xf32>
    %146 = arith.extui %145 : vector<8x128xi1> to vector<8x128xi32>
    %147 = arith.sitofp %146 : vector<8x128xi32> to vector<8x128xf32>
    %148 = arith.truncf %147 : vector<8x128xf32> to vector<8x128xbf16>
    %149 = arith.index_cast %c2_i32 : i32 to index
    %c0_76 = arith.constant 0 : index
    %c0_77 = arith.constant 0 : index
    %150 = vector.load %arg14[%149, %c0_76, %c0_77] : memref<8x8x128xbf16, #tpu.memory_space<vmem>>, vector<1x8x128xbf16>
    %151 = vector.shape_cast %150 : vector<1x8x128xbf16> to vector<8x128xbf16>
    %152 = vector.shape_cast %148 : vector<8x128xbf16> to vector<1x8x128xbf16>
    tpu.vector_store %arg14[%149, %c0_76, %c0_77], %152 {strides = array<i32>} : memref<8x8x128xbf16, #tpu.memory_space<vmem>>, vector<1x8x128xbf16>,
    %c3_i32 = arith.constant 3 : i32
    %153 = arith.index_cast %c3_i32 : i32 to index
    %c0_78 = arith.constant 0 : index
    %c0_79 = arith.constant 0 : index
    %154 = vector.load %arg13[%153, %c0_78, %c0_79] : memref<8x8x128xf32, #tpu.memory_space<vmem>>, vector<1x8x128xf32>
    %155 = vector.shape_cast %154 : vector<1x8x128xf32> to vector<8x128xf32>
    %c0_80 = arith.constant 0 : index
    %c0_81 = arith.constant 0 : index
    %156 = vector.load %arg15[%c0_80, %c0_81] : memref<8x128xf32, #tpu.memory_space<vmem>>, vector<8x128xf32>
    %cst_82 = arith.constant 1.000000e+00 : f32
    %157 = vector.broadcast %cst_82 : f32 to vector<8x128xf32>
    %158 = arith.cmpf ogt, %156, %157 : vector<8x128xf32>
    %159 = arith.extui %158 : vector<8x128xi1> to vector<8x128xi32>
    %160 = arith.sitofp %159 : vector<8x128xi32> to vector<8x128xf32>
    %161 = vector.broadcast %2 : f32 to vector<8x128xf32>
    %162 = arith.mulf %161, %156 : vector<8x128xf32>
    %163 = arith.addf %162, %155 : vector<8x128xf32>
    %cst_83 = arith.constant 1.000000e+00 : f32
    %164 = vector.broadcast %cst_83 : f32 to vector<8x128xf32>
    %165 = arith.mulf %160, %164 : vector<8x128xf32>
    %166 = arith.subf %163, %165 : vector<8x128xf32>
    %c0_84 = arith.constant 0 : index
    %c0_85 = arith.constant 0 : index
    %167 = vector.load %arg15[%c0_84, %c0_85] : memref<8x128xf32, #tpu.memory_space<vmem>>, vector<8x128xf32>
    tpu.vector_store %arg15[%c0_84, %c0_85], %166 {strides = array<i32>} : memref<8x128xf32, #tpu.memory_space<vmem>>, vector<8x128xf32>,
    %cst_86 = arith.constant 1.000000e+00 : f32
    %168 = vector.broadcast %cst_86 : f32 to vector<8x128xf32>
    %169 = arith.cmpf ogt, %166, %168 : vector<8x128xf32>
    %170 = arith.extui %169 : vector<8x128xi1> to vector<8x128xi32>
    %171 = arith.sitofp %170 : vector<8x128xi32> to vector<8x128xf32>
    %172 = arith.truncf %171 : vector<8x128xf32> to vector<8x128xbf16>
    %cst_87 = arith.constant dense<0.000000e+00> : vector<8x128xf32>
    %173 = tpu.matmul %172, %19, %cst_87 {dimension_numbers = #tpu.dot_dimension_numbers<[1], [0], [0], [1], [0, 0, 1, 1], [], []>} : vector<8x128xbf16>, vector<128x128xbf16>, vector<8x128xf32> -> vector<8x128xf32>
    %174 = vector.broadcast %20 : vector<1x128xf32> to vector<8x128xf32>
    %175 = arith.addf %173, %174 : vector<8x128xf32>
    %c0_88 = arith.constant 0 : index
    %c0_89 = arith.constant 0 : index
    %176 = vector.load %arg16[%c0_88, %c0_89] : memref<8x128xf32, #tpu.memory_space<vmem>>, vector<8x128xf32>
    %cst_90 = arith.constant 1.000000e+00 : f32
    %177 = vector.broadcast %cst_90 : f32 to vector<8x128xf32>
    %178 = arith.cmpf ogt, %176, %177 : vector<8x128xf32>
    %179 = arith.extui %178 : vector<8x128xi1> to vector<8x128xi32>
    %180 = arith.sitofp %179 : vector<8x128xi32> to vector<8x128xf32>
    %181 = vector.broadcast %5 : f32 to vector<8x128xf32>
    %182 = arith.mulf %181, %176 : vector<8x128xf32>
    %183 = arith.addf %182, %175 : vector<8x128xf32>
    %cst_91 = arith.constant 1.000000e+00 : f32
    %184 = vector.broadcast %cst_91 : f32 to vector<8x128xf32>
    %185 = arith.mulf %180, %184 : vector<8x128xf32>
    %186 = arith.subf %183, %185 : vector<8x128xf32>
    %c0_92 = arith.constant 0 : index
    %c0_93 = arith.constant 0 : index
    %187 = vector.load %arg16[%c0_92, %c0_93] : memref<8x128xf32, #tpu.memory_space<vmem>>, vector<8x128xf32>
    tpu.vector_store %arg16[%c0_92, %c0_93], %186 {strides = array<i32>} : memref<8x128xf32, #tpu.memory_space<vmem>>, vector<8x128xf32>,
    %cst_94 = arith.constant 1.000000e+00 : f32
    %188 = vector.broadcast %cst_94 : f32 to vector<8x128xf32>
    %189 = arith.cmpf ogt, %186, %188 : vector<8x128xf32>
    %190 = arith.extui %189 : vector<8x128xi1> to vector<8x128xi32>
    %191 = arith.sitofp %190 : vector<8x128xi32> to vector<8x128xf32>
    %192 = arith.truncf %191 : vector<8x128xf32> to vector<8x128xbf16>
    %193 = arith.index_cast %c3_i32 : i32 to index
    %c0_95 = arith.constant 0 : index
    %c0_96 = arith.constant 0 : index
    %194 = vector.load %arg14[%193, %c0_95, %c0_96] : memref<8x8x128xbf16, #tpu.memory_space<vmem>>, vector<1x8x128xbf16>
    %195 = vector.shape_cast %194 : vector<1x8x128xbf16> to vector<8x128xbf16>
    %196 = vector.shape_cast %192 : vector<8x128xbf16> to vector<1x8x128xbf16>
    tpu.vector_store %arg14[%193, %c0_95, %c0_96], %196 {strides = array<i32>} : memref<8x8x128xbf16, #tpu.memory_space<vmem>>, vector<1x8x128xbf16>,
    %c4_i32 = arith.constant 4 : i32
    %197 = arith.index_cast %c4_i32 : i32 to index
    %c0_97 = arith.constant 0 : index
    %c0_98 = arith.constant 0 : index
    %198 = vector.load %arg13[%197, %c0_97, %c0_98] : memref<8x8x128xf32, #tpu.memory_space<vmem>>, vector<1x8x128xf32>
    %199 = vector.shape_cast %198 : vector<1x8x128xf32> to vector<8x128xf32>
    %c0_99 = arith.constant 0 : index
    %c0_100 = arith.constant 0 : index
    %200 = vector.load %arg15[%c0_99, %c0_100] : memref<8x128xf32, #tpu.memory_space<vmem>>, vector<8x128xf32>
    %cst_101 = arith.constant 1.000000e+00 : f32
    %201 = vector.broadcast %cst_101 : f32 to vector<8x128xf32>
    %202 = arith.cmpf ogt, %200, %201 : vector<8x128xf32>
    %203 = arith.extui %202 : vector<8x128xi1> to vector<8x128xi32>
    %204 = arith.sitofp %203 : vector<8x128xi32> to vector<8x128xf32>
    %205 = vector.broadcast %2 : f32 to vector<8x128xf32>
    %206 = arith.mulf %205, %200 : vector<8x128xf32>
    %207 = arith.addf %206, %199 : vector<8x128xf32>
    %cst_102 = arith.constant 1.000000e+00 : f32
    %208 = vector.broadcast %cst_102 : f32 to vector<8x128xf32>
    %209 = arith.mulf %204, %208 : vector<8x128xf32>
    %210 = arith.subf %207, %209 : vector<8x128xf32>
    %c0_103 = arith.constant 0 : index
    %c0_104 = arith.constant 0 : index
    %211 = vector.load %arg15[%c0_103, %c0_104] : memref<8x128xf32, #tpu.memory_space<vmem>>, vector<8x128xf32>
    tpu.vector_store %arg15[%c0_103, %c0_104], %210 {strides = array<i32>} : memref<8x128xf32, #tpu.memory_space<vmem>>, vector<8x128xf32>,
    %cst_105 = arith.constant 1.000000e+00 : f32
    %212 = vector.broadcast %cst_105 : f32 to vector<8x128xf32>
    %213 = arith.cmpf ogt, %210, %212 : vector<8x128xf32>
    %214 = arith.extui %213 : vector<8x128xi1> to vector<8x128xi32>
    %215 = arith.sitofp %214 : vector<8x128xi32> to vector<8x128xf32>
    %216 = arith.truncf %215 : vector<8x128xf32> to vector<8x128xbf16>
    %cst_106 = arith.constant dense<0.000000e+00> : vector<8x128xf32>
    %217 = tpu.matmul %216, %19, %cst_106 {dimension_numbers = #tpu.dot_dimension_numbers<[1], [0], [0], [1], [0, 0, 1, 1], [], []>} : vector<8x128xbf16>, vector<128x128xbf16>, vector<8x128xf32> -> vector<8x128xf32>
    %218 = vector.broadcast %20 : vector<1x128xf32> to vector<8x128xf32>
    %219 = arith.addf %217, %218 : vector<8x128xf32>
    %c0_107 = arith.constant 0 : index
    %c0_108 = arith.constant 0 : index
    %220 = vector.load %arg16[%c0_107, %c0_108] : memref<8x128xf32, #tpu.memory_space<vmem>>, vector<8x128xf32>
    %cst_109 = arith.constant 1.000000e+00 : f32
    %221 = vector.broadcast %cst_109 : f32 to vector<8x128xf32>
    %222 = arith.cmpf ogt, %220, %221 : vector<8x128xf32>
    %223 = arith.extui %222 : vector<8x128xi1> to vector<8x128xi32>
    %224 = arith.sitofp %223 : vector<8x128xi32> to vector<8x128xf32>
    %225 = vector.broadcast %5 : f32 to vector<8x128xf32>
    %226 = arith.mulf %225, %220 : vector<8x128xf32>
    %227 = arith.addf %226, %219 : vector<8x128xf32>
    %cst_110 = arith.constant 1.000000e+00 : f32
    %228 = vector.broadcast %cst_110 : f32 to vector<8x128xf32>
    %229 = arith.mulf %224, %228 : vector<8x128xf32>
    %230 = arith.subf %227, %229 : vector<8x128xf32>
    %c0_111 = arith.constant 0 : index
    %c0_112 = arith.constant 0 : index
    %231 = vector.load %arg16[%c0_111, %c0_112] : memref<8x128xf32, #tpu.memory_space<vmem>>, vector<8x128xf32>
    tpu.vector_store %arg16[%c0_111, %c0_112], %230 {strides = array<i32>} : memref<8x128xf32, #tpu.memory_space<vmem>>, vector<8x128xf32>,
    %cst_113 = arith.constant 1.000000e+00 : f32
    %232 = vector.broadcast %cst_113 : f32 to vector<8x128xf32>
    %233 = arith.cmpf ogt, %230, %232 : vector<8x128xf32>
    %234 = arith.extui %233 : vector<8x128xi1> to vector<8x128xi32>
    %235 = arith.sitofp %234 : vector<8x128xi32> to vector<8x128xf32>
    %236 = arith.truncf %235 : vector<8x128xf32> to vector<8x128xbf16>
    %237 = arith.index_cast %c4_i32 : i32 to index
    %c0_114 = arith.constant 0 : index
    %c0_115 = arith.constant 0 : index
    %238 = vector.load %arg14[%237, %c0_114, %c0_115] : memref<8x8x128xbf16, #tpu.memory_space<vmem>>, vector<1x8x128xbf16>
    %239 = vector.shape_cast %238 : vector<1x8x128xbf16> to vector<8x128xbf16>
    %240 = vector.shape_cast %236 : vector<8x128xbf16> to vector<1x8x128xbf16>
    tpu.vector_store %arg14[%237, %c0_114, %c0_115], %240 {strides = array<i32>} : memref<8x8x128xbf16, #tpu.memory_space<vmem>>, vector<1x8x128xbf16>,
    %c5_i32 = arith.constant 5 : i32
    %241 = arith.index_cast %c5_i32 : i32 to index
    %c0_116 = arith.constant 0 : index
    %c0_117 = arith.constant 0 : index
    %242 = vector.load %arg13[%241, %c0_116, %c0_117] : memref<8x8x128xf32, #tpu.memory_space<vmem>>, vector<1x8x128xf32>
    %243 = vector.shape_cast %242 : vector<1x8x128xf32> to vector<8x128xf32>
    %c0_118 = arith.constant 0 : index
    %c0_119 = arith.constant 0 : index
    %244 = vector.load %arg15[%c0_118, %c0_119] : memref<8x128xf32, #tpu.memory_space<vmem>>, vector<8x128xf32>
    %cst_120 = arith.constant 1.000000e+00 : f32
    %245 = vector.broadcast %cst_120 : f32 to vector<8x128xf32>
    %246 = arith.cmpf ogt, %244, %245 : vector<8x128xf32>
    %247 = arith.extui %246 : vector<8x128xi1> to vector<8x128xi32>
    %248 = arith.sitofp %247 : vector<8x128xi32> to vector<8x128xf32>
    %249 = vector.broadcast %2 : f32 to vector<8x128xf32>
    %250 = arith.mulf %249, %244 : vector<8x128xf32>
    %251 = arith.addf %250, %243 : vector<8x128xf32>
    %cst_121 = arith.constant 1.000000e+00 : f32
    %252 = vector.broadcast %cst_121 : f32 to vector<8x128xf32>
    %253 = arith.mulf %248, %252 : vector<8x128xf32>
    %254 = arith.subf %251, %253 : vector<8x128xf32>
    %c0_122 = arith.constant 0 : index
    %c0_123 = arith.constant 0 : index
    %255 = vector.load %arg15[%c0_122, %c0_123] : memref<8x128xf32, #tpu.memory_space<vmem>>, vector<8x128xf32>
    tpu.vector_store %arg15[%c0_122, %c0_123], %254 {strides = array<i32>} : memref<8x128xf32, #tpu.memory_space<vmem>>, vector<8x128xf32>,
    %cst_124 = arith.constant 1.000000e+00 : f32
    %256 = vector.broadcast %cst_124 : f32 to vector<8x128xf32>
    %257 = arith.cmpf ogt, %254, %256 : vector<8x128xf32>
    %258 = arith.extui %257 : vector<8x128xi1> to vector<8x128xi32>
    %259 = arith.sitofp %258 : vector<8x128xi32> to vector<8x128xf32>
    %260 = arith.truncf %259 : vector<8x128xf32> to vector<8x128xbf16>
    %cst_125 = arith.constant dense<0.000000e+00> : vector<8x128xf32>
    %261 = tpu.matmul %260, %19, %cst_125 {dimension_numbers = #tpu.dot_dimension_numbers<[1], [0], [0], [1], [0, 0, 1, 1], [], []>} : vector<8x128xbf16>, vector<128x128xbf16>, vector<8x128xf32> -> vector<8x128xf32>
    %262 = vector.broadcast %20 : vector<1x128xf32> to vector<8x128xf32>
    %263 = arith.addf %261, %262 : vector<8x128xf32>
    %c0_126 = arith.constant 0 : index
    %c0_127 = arith.constant 0 : index
    %264 = vector.load %arg16[%c0_126, %c0_127] : memref<8x128xf32, #tpu.memory_space<vmem>>, vector<8x128xf32>
    %cst_128 = arith.constant 1.000000e+00 : f32
    %265 = vector.broadcast %cst_128 : f32 to vector<8x128xf32>
    %266 = arith.cmpf ogt, %264, %265 : vector<8x128xf32>
    %267 = arith.extui %266 : vector<8x128xi1> to vector<8x128xi32>
    %268 = arith.sitofp %267 : vector<8x128xi32> to vector<8x128xf32>
    %269 = vector.broadcast %5 : f32 to vector<8x128xf32>
    %270 = arith.mulf %269, %264 : vector<8x128xf32>
    %271 = arith.addf %270, %263 : vector<8x128xf32>
    %cst_129 = arith.constant 1.000000e+00 : f32
    %272 = vector.broadcast %cst_129 : f32 to vector<8x128xf32>
    %273 = arith.mulf %268, %272 : vector<8x128xf32>
    %274 = arith.subf %271, %273 : vector<8x128xf32>
    %c0_130 = arith.constant 0 : index
    %c0_131 = arith.constant 0 : index
    %275 = vector.load %arg16[%c0_130, %c0_131] : memref<8x128xf32, #tpu.memory_space<vmem>>, vector<8x128xf32>
    tpu.vector_store %arg16[%c0_130, %c0_131], %274 {strides = array<i32>} : memref<8x128xf32, #tpu.memory_space<vmem>>, vector<8x128xf32>,
    %cst_132 = arith.constant 1.000000e+00 : f32
    %276 = vector.broadcast %cst_132 : f32 to vector<8x128xf32>
    %277 = arith.cmpf ogt, %274, %276 : vector<8x128xf32>
    %278 = arith.extui %277 : vector<8x128xi1> to vector<8x128xi32>
    %279 = arith.sitofp %278 : vector<8x128xi32> to vector<8x128xf32>
    %280 = arith.truncf %279 : vector<8x128xf32> to vector<8x128xbf16>
    %281 = arith.index_cast %c5_i32 : i32 to index
    %c0_133 = arith.constant 0 : index
    %c0_134 = arith.constant 0 : index
    %282 = vector.load %arg14[%281, %c0_133, %c0_134] : memref<8x8x128xbf16, #tpu.memory_space<vmem>>, vector<1x8x128xbf16>
    %283 = vector.shape_cast %282 : vector<1x8x128xbf16> to vector<8x128xbf16>
    %284 = vector.shape_cast %280 : vector<8x128xbf16> to vector<1x8x128xbf16>
    tpu.vector_store %arg14[%281, %c0_133, %c0_134], %284 {strides = array<i32>} : memref<8x8x128xbf16, #tpu.memory_space<vmem>>, vector<1x8x128xbf16>,
    %c6_i32 = arith.constant 6 : i32
    %285 = arith.index_cast %c6_i32 : i32 to index
    %c0_135 = arith.constant 0 : index
    %c0_136 = arith.constant 0 : index
    %286 = vector.load %arg13[%285, %c0_135, %c0_136] : memref<8x8x128xf32, #tpu.memory_space<vmem>>, vector<1x8x128xf32>
    %287 = vector.shape_cast %286 : vector<1x8x128xf32> to vector<8x128xf32>
    %c0_137 = arith.constant 0 : index
    %c0_138 = arith.constant 0 : index
    %288 = vector.load %arg15[%c0_137, %c0_138] : memref<8x128xf32, #tpu.memory_space<vmem>>, vector<8x128xf32>
    %cst_139 = arith.constant 1.000000e+00 : f32
    %289 = vector.broadcast %cst_139 : f32 to vector<8x128xf32>
    %290 = arith.cmpf ogt, %288, %289 : vector<8x128xf32>
    %291 = arith.extui %290 : vector<8x128xi1> to vector<8x128xi32>
    %292 = arith.sitofp %291 : vector<8x128xi32> to vector<8x128xf32>
    %293 = vector.broadcast %2 : f32 to vector<8x128xf32>
    %294 = arith.mulf %293, %288 : vector<8x128xf32>
    %295 = arith.addf %294, %287 : vector<8x128xf32>
    %cst_140 = arith.constant 1.000000e+00 : f32
    %296 = vector.broadcast %cst_140 : f32 to vector<8x128xf32>
    %297 = arith.mulf %292, %296 : vector<8x128xf32>
    %298 = arith.subf %295, %297 : vector<8x128xf32>
    %c0_141 = arith.constant 0 : index
    %c0_142 = arith.constant 0 : index
    %299 = vector.load %arg15[%c0_141, %c0_142] : memref<8x128xf32, #tpu.memory_space<vmem>>, vector<8x128xf32>
    tpu.vector_store %arg15[%c0_141, %c0_142], %298 {strides = array<i32>} : memref<8x128xf32, #tpu.memory_space<vmem>>, vector<8x128xf32>,
    %cst_143 = arith.constant 1.000000e+00 : f32
    %300 = vector.broadcast %cst_143 : f32 to vector<8x128xf32>
    %301 = arith.cmpf ogt, %298, %300 : vector<8x128xf32>
    %302 = arith.extui %301 : vector<8x128xi1> to vector<8x128xi32>
    %303 = arith.sitofp %302 : vector<8x128xi32> to vector<8x128xf32>
    %304 = arith.truncf %303 : vector<8x128xf32> to vector<8x128xbf16>
    %cst_144 = arith.constant dense<0.000000e+00> : vector<8x128xf32>
    %305 = tpu.matmul %304, %19, %cst_144 {dimension_numbers = #tpu.dot_dimension_numbers<[1], [0], [0], [1], [0, 0, 1, 1], [], []>} : vector<8x128xbf16>, vector<128x128xbf16>, vector<8x128xf32> -> vector<8x128xf32>
    %306 = vector.broadcast %20 : vector<1x128xf32> to vector<8x128xf32>
    %307 = arith.addf %305, %306 : vector<8x128xf32>
    %c0_145 = arith.constant 0 : index
    %c0_146 = arith.constant 0 : index
    %308 = vector.load %arg16[%c0_145, %c0_146] : memref<8x128xf32, #tpu.memory_space<vmem>>, vector<8x128xf32>
    %cst_147 = arith.constant 1.000000e+00 : f32
    %309 = vector.broadcast %cst_147 : f32 to vector<8x128xf32>
    %310 = arith.cmpf ogt, %308, %309 : vector<8x128xf32>
    %311 = arith.extui %310 : vector<8x128xi1> to vector<8x128xi32>
    %312 = arith.sitofp %311 : vector<8x128xi32> to vector<8x128xf32>
    %313 = vector.broadcast %5 : f32 to vector<8x128xf32>
    %314 = arith.mulf %313, %308 : vector<8x128xf32>
    %315 = arith.addf %314, %307 : vector<8x128xf32>
    %cst_148 = arith.constant 1.000000e+00 : f32
    %316 = vector.broadcast %cst_148 : f32 to vector<8x128xf32>
    %317 = arith.mulf %312, %316 : vector<8x128xf32>
    %318 = arith.subf %315, %317 : vector<8x128xf32>
    %c0_149 = arith.constant 0 : index
    %c0_150 = arith.constant 0 : index
    %319 = vector.load %arg16[%c0_149, %c0_150] : memref<8x128xf32, #tpu.memory_space<vmem>>, vector<8x128xf32>
    tpu.vector_store %arg16[%c0_149, %c0_150], %318 {strides = array<i32>} : memref<8x128xf32, #tpu.memory_space<vmem>>, vector<8x128xf32>,
    %cst_151 = arith.constant 1.000000e+00 : f32
    %320 = vector.broadcast %cst_151 : f32 to vector<8x128xf32>
    %321 = arith.cmpf ogt, %318, %320 : vector<8x128xf32>
    %322 = arith.extui %321 : vector<8x128xi1> to vector<8x128xi32>
    %323 = arith.sitofp %322 : vector<8x128xi32> to vector<8x128xf32>
    %324 = arith.truncf %323 : vector<8x128xf32> to vector<8x128xbf16>
    %325 = arith.index_cast %c6_i32 : i32 to index
    %c0_152 = arith.constant 0 : index
    %c0_153 = arith.constant 0 : index
    %326 = vector.load %arg14[%325, %c0_152, %c0_153] : memref<8x8x128xbf16, #tpu.memory_space<vmem>>, vector<1x8x128xbf16>
    %327 = vector.shape_cast %326 : vector<1x8x128xbf16> to vector<8x128xbf16>
    %328 = vector.shape_cast %324 : vector<8x128xbf16> to vector<1x8x128xbf16>
    tpu.vector_store %arg14[%325, %c0_152, %c0_153], %328 {strides = array<i32>} : memref<8x8x128xbf16, #tpu.memory_space<vmem>>, vector<1x8x128xbf16>,
    %c7_i32 = arith.constant 7 : i32
    %329 = arith.index_cast %c7_i32 : i32 to index
    %c0_154 = arith.constant 0 : index
    %c0_155 = arith.constant 0 : index
    %330 = vector.load %arg13[%329, %c0_154, %c0_155] : memref<8x8x128xf32, #tpu.memory_space<vmem>>, vector<1x8x128xf32>
    %331 = vector.shape_cast %330 : vector<1x8x128xf32> to vector<8x128xf32>
    %c0_156 = arith.constant 0 : index
    %c0_157 = arith.constant 0 : index
    %332 = vector.load %arg15[%c0_156, %c0_157] : memref<8x128xf32, #tpu.memory_space<vmem>>, vector<8x128xf32>
    %cst_158 = arith.constant 1.000000e+00 : f32
    %333 = vector.broadcast %cst_158 : f32 to vector<8x128xf32>
    %334 = arith.cmpf ogt, %332, %333 : vector<8x128xf32>
    %335 = arith.extui %334 : vector<8x128xi1> to vector<8x128xi32>
    %336 = arith.sitofp %335 : vector<8x128xi32> to vector<8x128xf32>
    %337 = vector.broadcast %2 : f32 to vector<8x128xf32>
    %338 = arith.mulf %337, %332 : vector<8x128xf32>
    %339 = arith.addf %338, %331 : vector<8x128xf32>
    %cst_159 = arith.constant 1.000000e+00 : f32
    %340 = vector.broadcast %cst_159 : f32 to vector<8x128xf32>
    %341 = arith.mulf %336, %340 : vector<8x128xf32>
    %342 = arith.subf %339, %341 : vector<8x128xf32>
    %c0_160 = arith.constant 0 : index
    %c0_161 = arith.constant 0 : index
    %343 = vector.load %arg15[%c0_160, %c0_161] : memref<8x128xf32, #tpu.memory_space<vmem>>, vector<8x128xf32>
    tpu.vector_store %arg15[%c0_160, %c0_161], %342 {strides = array<i32>} : memref<8x128xf32, #tpu.memory_space<vmem>>, vector<8x128xf32>,
    %cst_162 = arith.constant 1.000000e+00 : f32
    %344 = vector.broadcast %cst_162 : f32 to vector<8x128xf32>
    %345 = arith.cmpf ogt, %342, %344 : vector<8x128xf32>
    %346 = arith.extui %345 : vector<8x128xi1> to vector<8x128xi32>
    %347 = arith.sitofp %346 : vector<8x128xi32> to vector<8x128xf32>
    %348 = arith.truncf %347 : vector<8x128xf32> to vector<8x128xbf16>
    %cst_163 = arith.constant dense<0.000000e+00> : vector<8x128xf32>
    %349 = tpu.matmul %348, %19, %cst_163 {dimension_numbers = #tpu.dot_dimension_numbers<[1], [0], [0], [1], [0, 0, 1, 1], [], []>} : vector<8x128xbf16>, vector<128x128xbf16>, vector<8x128xf32> -> vector<8x128xf32>
    %350 = vector.broadcast %20 : vector<1x128xf32> to vector<8x128xf32>
    %351 = arith.addf %349, %350 : vector<8x128xf32>
    %c0_164 = arith.constant 0 : index
    %c0_165 = arith.constant 0 : index
    %352 = vector.load %arg16[%c0_164, %c0_165] : memref<8x128xf32, #tpu.memory_space<vmem>>, vector<8x128xf32>
    %cst_166 = arith.constant 1.000000e+00 : f32
    %353 = vector.broadcast %cst_166 : f32 to vector<8x128xf32>
    %354 = arith.cmpf ogt, %352, %353 : vector<8x128xf32>
    %355 = arith.extui %354 : vector<8x128xi1> to vector<8x128xi32>
    %356 = arith.sitofp %355 : vector<8x128xi32> to vector<8x128xf32>
    %357 = vector.broadcast %5 : f32 to vector<8x128xf32>
    %358 = arith.mulf %357, %352 : vector<8x128xf32>
    %359 = arith.addf %358, %351 : vector<8x128xf32>
    %cst_167 = arith.constant 1.000000e+00 : f32
    %360 = vector.broadcast %cst_167 : f32 to vector<8x128xf32>
    %361 = arith.mulf %356, %360 : vector<8x128xf32>
    %362 = arith.subf %359, %361 : vector<8x128xf32>
    %c0_168 = arith.constant 0 : index
    %c0_169 = arith.constant 0 : index
    %363 = vector.load %arg16[%c0_168, %c0_169] : memref<8x128xf32, #tpu.memory_space<vmem>>, vector<8x128xf32>
    tpu.vector_store %arg16[%c0_168, %c0_169], %362 {strides = array<i32>} : memref<8x128xf32, #tpu.memory_space<vmem>>, vector<8x128xf32>,
    %cst_170 = arith.constant 1.000000e+00 : f32
    %364 = vector.broadcast %cst_170 : f32 to vector<8x128xf32>
    %365 = arith.cmpf ogt, %362, %364 : vector<8x128xf32>
    %366 = arith.extui %365 : vector<8x128xi1> to vector<8x128xi32>
    %367 = arith.sitofp %366 : vector<8x128xi32> to vector<8x128xf32>
    %368 = arith.truncf %367 : vector<8x128xf32> to vector<8x128xbf16>
    %369 = arith.index_cast %c7_i32 : i32 to index
    %c0_171 = arith.constant 0 : index
    %c0_172 = arith.constant 0 : index
    %370 = vector.load %arg14[%369, %c0_171, %c0_172] : memref<8x8x128xbf16, #tpu.memory_space<vmem>>, vector<1x8x128xbf16>
    %371 = vector.shape_cast %370 : vector<1x8x128xbf16> to vector<8x128xbf16>
    %372 = vector.shape_cast %368 : vector<8x128xbf16> to vector<1x8x128xbf16>
    tpu.vector_store %arg14[%369, %c0_171, %c0_172], %372 {strides = array<i32>} : memref<8x8x128xbf16, #tpu.memory_space<vmem>>, vector<1x8x128xbf16>,
    %c8_i32 = arith.constant 8 : i32
    %c0_173 = arith.constant 0 : index
    %c0_174 = arith.constant 0 : index
    %c0_175 = arith.constant 0 : index
    %373 = vector.load %arg14[%c0_173, %c0_174, %c0_175] : memref<8x8x128xbf16, #tpu.memory_space<vmem>>, vector<8x8x128xbf16>
    %374 = arith.extf %373 : vector<8x8x128xbf16> to vector<8x8x128xf32>
    %c0_176 = arith.constant 0 : index
    %c0_177 = arith.constant 0 : index
    %375 = vector.load %arg7[%c0_176, %c0_177] : memref<1x128xf32, #tpu.memory_space<vmem>>, vector<1x128xf32>
    %376 = vector.shape_cast %375 : vector<1x128xf32> to vector<1x1x128xf32>
    %377 = vector.broadcast %376 : vector<1x1x128xf32> to vector<8x8x128xf32>
    %378 = arith.mulf %374, %377 : vector<8x8x128xf32>
    %cst_178 = arith.constant dense<0.000000e+00> : vector<8x8xf32>
    %379 = vector.multi_reduction <add>, %378, %cst_178 [2] : vector<8x8x128xf32> to vector<8x8xf32>
    %380 = vector.broadcast %6 : f32 to vector<8x8xf32>
    %381 = arith.addf %379, %380 : vector<8x8xf32>
    %c0_179 = arith.constant 0 : index
    %c0_180 = arith.constant 0 : index
    %382 = vector.load %arg8[%c0_179, %c0_180] : memref<8x8xf32, #tpu.memory_space<vmem>>, vector<8x8xf32>
    %cst_181 = arith.constant dense<0.000000e+00> : vector<8x8xf32>
    %383 = tpu.matmul %382, %381, %cst_181 {dimension_numbers = #tpu.dot_dimension_numbers<[1], [0], [0], [1], [0, 0, 1, 1], [], []>} : vector<8x8xf32>, vector<8x8xf32>, vector<8x8xf32> -> vector<8x8xf32>
    %c0_182 = arith.constant 0 : index
    %c0_183 = arith.constant 0 : index
    %384 = vector.load %arg9[%c0_182, %c0_183] : memref<8x1xf32, #tpu.memory_space<vmem>>, vector<8x1xf32>
    %c0_184 = arith.constant 0 : index
    %c0_185 = arith.constant 0 : index
    %385 = vector.load %arg17[%c0_184, %c0_185] : memref<1x8xf32, #tpu.memory_space<vmem>>, vector<1x8xf32>
    %386 = vector.broadcast %384 : vector<8x1xf32> to vector<8x8xf32>
    %387 = vector.broadcast %385 : vector<1x8xf32> to vector<8x8xf32>
    %388 = arith.mulf %386, %387 : vector<8x8xf32>
    %389 = arith.addf %383, %388 : vector<8x8xf32>
    %c0_186 = arith.constant 0 : index
    %c0_187 = arith.constant 0 : index
    %c0_188 = arith.constant 0 : index
    %390 = vector.load %arg12[%c0_186, %c0_187, %c0_188] : memref<1x8x8xf32, #tpu.memory_space<vmem>>, vector<1x8x8xf32>
    %391 = vector.shape_cast %390 : vector<1x8x8xf32> to vector<8x8xf32>
    %392 = vector.shape_cast %389 : vector<8x8xf32> to vector<1x8x8xf32>
    tpu.vector_store %arg12[%c0_186, %c0_187, %c0_188], %392 {strides = array<i32>} : memref<1x8x8xf32, #tpu.memory_space<vmem>>, vector<1x8x8xf32>,
    %393 = vector.extract_strided_slice %389 {offsets = [7, 0], sizes = [1, 8], strides = [1, 1]} : vector<8x8xf32> to vector<1x8xf32>
    %c0_189 = arith.constant 0 : index
    %c0_190 = arith.constant 0 : index
    %394 = vector.load %arg17[%c0_189, %c0_190] : memref<1x8xf32, #tpu.memory_space<vmem>>, vector<1x8xf32>
    tpu.vector_store %arg17[%c0_189, %c0_190], %393 {strides = array<i32>} : memref<1x8xf32, #tpu.memory_space<vmem>>, vector<1x8xf32>,
    return
  }
  func.func @transform_0(%arg0: i32, %arg1: i32) -> (i32, i32, i32) {
    %c0_i32 = arith.constant 0 : i32
    %c0_i32_0 = arith.constant 0 : i32
    return %arg1, %arg0, %c0_i32 : i32, i32, i32
  }
  func.func @transform_1(%arg0: i32, %arg1: i32) -> (i32, i32) {
    %c0_i32 = arith.constant 0 : i32
    %c0_i32_0 = arith.constant 0 : i32
    %c0_i32_1 = arith.constant 0 : i32
    return %c0_i32, %c0_i32_0 : i32, i32
  }
  func.func @transform_2(%arg0: i32, %arg1: i32) -> (i32, i32) {
    %c0_i32 = arith.constant 0 : i32
    %c0_i32_0 = arith.constant 0 : i32
    %c0_i32_1 = arith.constant 0 : i32
    return %c0_i32, %c0_i32_0 : i32, i32
  }
  func.func @transform_3(%arg0: i32, %arg1: i32) -> (i32, i32) {
    %c0_i32 = arith.constant 0 : i32
    %c0_i32_0 = arith.constant 0 : i32
    %c0_i32_1 = arith.constant 0 : i32
    return %c0_i32, %c0_i32_0 : i32, i32
  }
  func.func @transform_4(%arg0: i32, %arg1: i32) -> (i32, i32) {
    %c0_i32 = arith.constant 0 : i32
    %c0_i32_0 = arith.constant 0 : i32
    %c0_i32_1 = arith.constant 0 : i32
    return %c0_i32, %c0_i32_0 : i32, i32
  }
  func.func @transform_5(%arg0: i32, %arg1: i32) -> (i32, i32) {
    %c0_i32 = arith.constant 0 : i32
    %c0_i32_0 = arith.constant 0 : i32
    %c0_i32_1 = arith.constant 0 : i32
    return %c0_i32, %c0_i32_0 : i32, i32
  }
  func.func @transform_6(%arg0: i32, %arg1: i32) -> (i32, i32) {
    %c0_i32 = arith.constant 0 : i32
    %c0_i32_0 = arith.constant 0 : i32
    %c0_i32_1 = arith.constant 0 : i32
    return %c0_i32, %c0_i32_0 : i32, i32
  }
  func.func @transform_7(%arg0: i32, %arg1: i32) -> (i32, i32) {
    %c0_i32 = arith.constant 0 : i32
    %c0_i32_0 = arith.constant 0 : i32
    %c0_i32_1 = arith.constant 0 : i32
    return %c0_i32, %c0_i32_0 : i32, i32
  }
  func.func @transform_8(%arg0: i32, %arg1: i32) -> i32 {
    %c0_i32 = arith.constant 0 : i32
    %c0_i32_0 = arith.constant 0 : i32
    return %c0_i32 : i32
  }
  func.func @transform_9(%arg0: i32, %arg1: i32) -> i32 {
    %c0_i32 = arith.constant 0 : i32
    %c0_i32_0 = arith.constant 0 : i32
    return %c0_i32 : i32
  }
  func.func @transform_10(%arg0: i32, %arg1: i32) -> (i32, i32, i32) {
    %c0_i32 = arith.constant 0 : i32
    %c0_i32_0 = arith.constant 0 : i32
    return %arg0, %arg1, %c0_i32 : i32, i32, i32
  }
}

</mosaic_0001>

<bundles_post_ra>
// kernel: spiking_rnn_forward.1
= control target key start
LH: loop header
LB: loop body
LE: loop exit
PB: predicated region body
PF: predicated region fallthrough
CT: control target
= control target key end

     0   :  { %16 = vsyncpa [#allocation9], 0  ;;  %s2303_s0 = inlined_call_operand.hbm [shape: bf16[8,8,128], index: 0, kind: input, shape index: {}]   ;;  %s2304_s1 = inlined_call_operand.hbm [shape: bf16[128,128], index: 1, kind: input, shape index: {}]   ;;  %s2305_s2 = inlined_call_operand.hbm [shape: f32[1,128], index: 2, kind: input, shape index: {}]   ;;  %s2306_s3 = inlined_call_operand.hbm [shape: bf16[128,128], index: 3, kind: input, shape index: {}]   ;;  %s2307_s4 = inlined_call_operand.hbm [shape: f32[1,128], index: 4, kind: input, shape index: {}]   ;;  %s2308_s5 = inlined_call_operand.hbm [shape: f32[1,128], index: 5, kind: input, shape index: {}]   ;;  %s2309_s6 = inlined_call_operand.hbm [shape: f32[8,8], index: 6, kind: input, shape index: {}]   ;;  %s2310_s7 = inlined_call_operand.hbm [shape: f32[8,1], index: 7, kind: input, shape index: {}]   ;;  %s2311_s8 = inlined_call_operand.hbm [shape: f32[3], index: 8, kind: input, shape index: {}]   ;;  %s2312_s9 = inlined_call_operand.<no memory space> [shape: f32[1], index: 9, kind: input, shape index: {}]   ;;  %s2313_s10 = inlined_call_operand.hbm [shape: f32[1,8,8], index: 10, kind: output, shape index: {}]  }
   0x1   :  { %17 = vsyncpa [#allocation13], 0 }
   0x2   :  { %18 = vsyncpa [#allocation16], 0 }
   0x3   :  { %19 = vsyncpa [#allocation19], 0 }
   0x4   :  { %20 = vsyncpa [#allocation22], 0 }
   0x5   :  { %21 = vsyncpa [#allocation11], 0 }
   0x6   :  { %22 = vsyncpa [#allocation10], 0  ;;  %s1808_s13 = smov [#allocation12]   ;;  %s1809_s15 = smov [#allocation15]  }
   0x7   :  { %s40_s14 = sshll.u32 %s1808_s13, 4  ;;  %s62_s16 = sshll.u32 %s1809_s15, 4  ;;  %s41_s14 = int_to_ptr.vmem [resolvable:$true] %s40_s14  ;;  %s1881_s16 = int_to_ptr.vmem [resolvable:$true] %s62_s16 }
   0x8   :  { %s1586_s19 = scalar_lea.hbm %s2304_s1, 1024 }
   0x9   :  { %p1587_p0 = scmp.ne.s32.totalorder %s2304_s1, %s1586_s19  ;;  %p1590_p1 = scmp.lt.u32.totalorder %s1586_s19, %s2304_s1 }
   0xb   :  { %p1592_p2 = pnand %p1590_p1, %p1587_p0 }
   0xd   :  { %1595 = shalt.err (!%p1592_p2)
}
   0xe   :  { %s1596_s24 = scalar_lea.vmem %s41_s14, 1024  ;;  %p1601_p4 = scmp.lt.s32.totalorder %s41_s14, %s41_s14 }
   0xf   :  { %p1597_p3 = scmp.ne.s32.totalorder %s41_s14, %s1596_s24  ;;  %p1602_p5 = scmp.lt.s32.totalorder %s1596_s24, %s1596_s24 }
  0x11   :  { %p1603_p6 = por %p1602_p5, %p1601_p4 }
  0x13   :  { %p1604_p7 = pnand %p1603_p6, %p1597_p3 }
  0x15   :  { %1607 = shalt.err (!%p1604_p7)
}
  0x16   :  { %s1810_s25 = smov 64   ;;  %s1811_s26 = smov 4  }
  0x17   :  { %46 = dma.hbm_to_vmem [thread:$0]  %s2304_s1, 1024, %s41_s14, [#allocation13], %s1810_s25, %s1810_s25, %s1811_s26  }
  0x18   :  { %s1608_s11 = scalar_lea.hbm %s2306_s3, 1024 }
  0x19   :  { %p1609_p8 = scmp.ne.s32.totalorder %s2306_s3, %s1608_s11  ;;  %p1612_p9 = scmp.lt.u32.totalorder %s1608_s11, %s2306_s3 }
  0x1b   :  { %p1614_p10 = pnand %p1612_p9, %p1609_p8 }
  0x1d   :  { %1617 = shalt.err (!%p1614_p10)
}
  0x1e   :  { %s1618_s18 = scalar_lea.vmem %s1881_s16, 1024  ;;  %p1623_p12 = scmp.lt.s32.totalorder %s1881_s16, %s1881_s16 }
  0x1f   :  { %p1619_p11 = scmp.ne.s32.totalorder %s1881_s16, %s1618_s18  ;;  %p1624_p13 = scmp.lt.s32.totalorder %s1618_s18, %s1618_s18 }
  0x21   :  { %p1625_p0 = por %p1624_p13, %p1623_p12 }
  0x23   :  { %p1626_p1 = pnand %p1625_p0, %p1619_p11 }
  0x25   :  { %1629 = shalt.err (!%p1626_p1)
}
  0x26   :  { %68 = dma.hbm_to_vmem [thread:$0]  %s2306_s3, 1024, %s1881_s16, [#allocation16], %s1810_s25, %s1810_s25, %s1811_s26  }
  0x27   :  { %s1812_s19 = smov [#allocation18]   ;;  %s1813_s21 = smov [#allocation8]  }
  0x28   :  { %s85_s20 = sshll.u32 %s1812_s19, 4  ;;  %s28_s22 = sshll.u32 %s1813_s21, 4  ;;  %s86_s20 = int_to_ptr.vmem [resolvable:$true] %s85_s20  ;;  %s1918_s22 = int_to_ptr.vmem [resolvable:$true] %s28_s22 }
  0x29   :  { %s1630_s27 = scalar_lea.hbm %s2308_s5, 16 }
  0x2a   :  { %p1631_p2 = scmp.ne.s32.totalorder %s2308_s5, %s1630_s27  ;;  %p1634_p3 = scmp.lt.u32.totalorder %s1630_s27, %s2308_s5 }
  0x2c   :  { %p1636_p4 = pnand %p1634_p3, %p1631_p2 }
  0x2e   :  { %1639 = shalt.err (!%p1636_p4)
}
  0x2f   :  { %s1640_s3 = scalar_lea.vmem %s86_s20, 16  ;;  %s1644_s16 = scalar_lea.vmem %s86_s20, 32 }
  0x30   :  { %p1641_p5 = scmp.ne.s32.totalorder %s86_s20, %s1640_s3  ;;  %p1645_p6 = scmp.lt.s32.totalorder %s86_s20, %s86_s20 }
  0x31   :  { %p1646_p7 = scmp.lt.s32.totalorder %s1644_s16, %s1640_s3 }
  0x33   :  { %p1647_p8 = por %p1646_p7, %p1645_p6 }
  0x35   :  { %p1648_p9 = pnand %p1647_p8, %p1641_p5 }
  0x37   :  { %1651 = shalt.err (!%p1648_p9)
}
  0x38   :  { %88 = dma.hbm_to_vmem [thread:$0]  %s2308_s5, 16, %s86_s20, [#allocation19]  }
  0x39   :  { %s1652_s18 = scalar_lea.hbm %s2303_s0, 512 }
  0x3a   :  { %p1653_p10 = scmp.ne.s32.totalorder %s2303_s0, %s1652_s18  ;;  %p1656_p11 = scmp.lt.u32.totalorder %s1652_s18, %s2303_s0 }
  0x3c   :  { %p1658_p12 = pnand %p1656_p11, %p1653_p10 }
  0x3e   :  { %1661 = shalt.err (!%p1658_p12)
}
  0x3f   :  { %s1662_s23 = scalar_lea.vmem %s1918_s22, 512  ;;  %p1667_p0 = scmp.lt.s32.totalorder %s1918_s22, %s1918_s22 }
  0x40   :  { %p1663_p13 = scmp.ne.s32.totalorder %s1918_s22, %s1662_s23  ;;  %p1668_p1 = scmp.lt.s32.totalorder %s1662_s23, %s1662_s23 }
  0x42   :  { %p1669_p2 = por %p1668_p1, %p1667_p0 }
  0x44   :  { %p1670_p3 = pnand %p1669_p2, %p1663_p13 }
  0x46   :  { %1673 = shalt.err (!%p1670_p3)
}
  0x47   :  { %34 = dma.hbm_to_vmem [thread:$0]  %s2303_s0, 512, %s1918_s22, [#allocation9], %s1810_s25, %s1810_s25, %s1811_s26  }
  0x48   :  { %s1814_s24 = smov [#allocation14]   ;;  %s1815_s28 = smov [#allocation17]  }
  0x49   :  { %s53_s27 = sshll.u32 %s1814_s24, 4  ;;  %s75_s29 = sshll.u32 %s1815_s28, 4  ;;  %s54_s27 = int_to_ptr.vmem [resolvable:$true] %s53_s27  ;;  %s76_s29 = int_to_ptr.vmem [resolvable:$true] %s75_s29 }
  0x4a   :  { %s1674_s3 = scalar_lea.hbm %s2305_s2, 16 }
  0x4b   :  { %p1675_p4 = scmp.ne.s32.totalorder %s2305_s2, %s1674_s3  ;;  %p1678_p5 = scmp.lt.u32.totalorder %s1674_s3, %s2305_s2 }
  0x4d   :  { %p1680_p6 = pnand %p1678_p5, %p1675_p4 }
  0x4f   :  { %1683 = shalt.err (!%p1680_p6)
}
  0x50   :  { %s1684_s0 = scalar_lea.vmem %s54_s27, 16  ;;  %s1688_s25 = scalar_lea.vmem %s54_s27, 32 }
  0x51   :  { %p1685_p7 = scmp.ne.s32.totalorder %s54_s27, %s1684_s0  ;;  %p1689_p8 = scmp.lt.s32.totalorder %s54_s27, %s54_s27 }
  0x52   :  { %p1690_p9 = scmp.lt.s32.totalorder %s1688_s25, %s1684_s0 }
  0x54   :  { %p1691_p10 = por %p1690_p9, %p1689_p8 }
  0x56   :  { %p1692_p11 = pnand %p1691_p10, %p1685_p7 }
  0x58   :  { %1695 = shalt.err (!%p1692_p11)
}
  0x59   :  { %56 = dma.hbm_to_vmem [thread:$0]  %s2305_s2, 16, %s54_s27, [#allocation13]  }
  0x5a   :  { %s1696_s1 = scalar_lea.hbm %s2307_s4, 16 }
  0x5b   :  { %p1697_p12 = scmp.ne.s32.totalorder %s2307_s4, %s1696_s1  ;;  %p1700_p13 = scmp.lt.u32.totalorder %s1696_s1, %s2307_s4 }
  0x5d   :  { %p1702_p0 = pnand %p1700_p13, %p1697_p12 }
  0x5f   :  { %1705 = shalt.err (!%p1702_p0)
}
  0x60   :  { %s1706_s5 = scalar_lea.vmem %s76_s29, 16  ;;  %s1710_s20 = scalar_lea.vmem %s76_s29, 32 }
  0x61   :  { %p1707_p1 = scmp.ne.s32.totalorder %s76_s29, %s1706_s5  ;;  %p1711_p2 = scmp.lt.s32.totalorder %s76_s29, %s76_s29 }
  0x62   :  { %p1712_p3 = scmp.lt.s32.totalorder %s1710_s20, %s1706_s5 }
  0x64   :  { %p1713_p4 = por %p1712_p3, %p1711_p2 }
  0x66   :  { %p1714_p5 = pnand %p1713_p4, %p1707_p1 }
  0x68   :  { %1717 = shalt.err (!%p1714_p5)
}
  0x69   :  { %78 = dma.hbm_to_vmem [thread:$0]  %s2307_s4, 16, %s76_s29, [#allocation16]  }
  0x6a   :  { %s1816_s27 = smov [#allocation20]   ;;  %s1817_s30 = smov [#allocation21]  }
  0x6b   :  { %s95_s28 = sshll.u32 %s1816_s27, 4  ;;  %s105_s11 = sshll.u32 %s1817_s30, 4  ;;  %s96_s28 = int_to_ptr.vmem [resolvable:$true] %s95_s28  ;;  %s106_s11 = int_to_ptr.vmem [resolvable:$true] %s105_s11 }
  0x6c   :  { %s1718_s12 = scalar_lea.hbm %s2309_s6, 128 }
  0x6d   :  { %p1719_p6 = scmp.ne.s32.totalorder %s2309_s6, %s1718_s12  ;;  %p1722_p7 = scmp.lt.u32.totalorder %s1718_s12, %s2309_s6 }
  0x6f   :  { %p1724_p8 = pnand %p1722_p7, %p1719_p6 }
  0x71   :  { %1727 = shalt.err (!%p1724_p8)
}
  0x72   :  { %s1728_s4 = scalar_lea.vmem %s96_s28, 128  ;;  %p1733_p10 = scmp.lt.s32.totalorder %s96_s28, %s96_s28 }
  0x73   :  { %p1729_p9 = scmp.ne.s32.totalorder %s96_s28, %s1728_s4  ;;  %p1734_p11 = scmp.lt.s32.totalorder %s1728_s4, %s1728_s4 }
  0x75   :  { %p1735_p12 = por %p1734_p11, %p1733_p10 }
  0x77   :  { %p1736_p13 = pnand %p1735_p12, %p1729_p9 }
  0x79   :  { %1739 = shalt.err (!%p1736_p13)
}
  0x7a   :  { %98 = dma.hbm_to_vmem [thread:$0]  %s2309_s6, 128, %s96_s28, [#allocation19]  }
  0x7b   :  { %s1740_s18 = scalar_lea.hbm %s2310_s7, 128 }
  0x7c   :  { %p1741_p0 = scmp.ne.s32.totalorder %s2310_s7, %s1740_s18  ;;  %p1744_p1 = scmp.lt.u32.totalorder %s1740_s18, %s2310_s7 }
  0x7e   :  { %p1746_p2 = pnand %p1744_p1, %p1741_p0 }
  0x80   :  { %1749 = shalt.err (!%p1746_p2)
}
  0x81   :  { %s1750_s23 = scalar_lea.vmem %s106_s11, 128  ;;  %p1755_p4 = scmp.lt.s32.totalorder %s106_s11, %s106_s11 }
  0x82   :  { %p1751_p3 = scmp.ne.s32.totalorder %s106_s11, %s1750_s23  ;;  %p1756_p5 = scmp.lt.s32.totalorder %s1750_s23, %s1750_s23 }
  0x84   :  { %p1757_p6 = por %p1756_p5, %p1755_p4 }
  0x86   :  { %p1758_p7 = pnand %p1757_p6, %p1751_p3 }
  0x88   :  { %1761 = shalt.err (!%p1758_p7)
}
  0x89   :  { %108 = dma.hbm_to_vmem [thread:$0]  %s2310_s7, 128, %s106_s11, [#allocation22]  }
  0x8a   :  { %s1762_s24 = scalar_lea.hbm %s2311_s8, 16 }
  0x8b   :  { %p1763_p8 = scmp.ne.s32.totalorder %s2311_s8, %s1762_s24  ;;  %p1766_p9 = scmp.lt.u32.totalorder %s1762_s24, %s2311_s8 }
  0x8d   :  { %p1768_p10 = pnand %p1766_p9, %p1763_p8 }
  0x8f   :  { %1771 = shalt.err (!%p1768_p10)
}
  0x90   :  { %s1818_s16 = smov [#allocation23]  }
  0x91   :  { %116 = dma.hbm_to_smem %s2311_s8, 16, %s1818_s16, [#allocation11]  }
  0x92   :  { %1794 = dma.done.wait [#allocation9], 512  }
  0x93   :  { %1795 = vsyncadd [#allocation9], 4294966784 }
  0x94   :  { %1796 = dma.done.wait [#allocation13], 1040  }
  0x95   :  { %1797 = vsyncadd [#allocation13], 4294966256 }
  0x96   :  { %1798 = dma.done.wait [#allocation16], 1040  }
  0x97   :  { %1799 = vsyncadd [#allocation16], 4294966256 }
  0x98   :  { %1800 = dma.done.wait [#allocation19], 144  }
  0x99   :  { %1801 = vsyncadd [#allocation19], 4294967152 }
  0x9a   :  { %1802 = dma.done.wait [#allocation22], 128  }
  0x9b   :  { %1803 = vsyncadd [#allocation22], 4294967168 }
  0x9c   :  { %1804 = dma.done.wait [#allocation11], 16  }
  0x9d   :  { %1805 = vsyncadd [#allocation11], 4294967280 }
  0x9e   :  { %146 = sfence }
  0x9f   :  { %v1566_v0 = vld [vmem:[#allocation12] sm:$0xff]   ;;  %v1567_v1 = vld [vmem:[#allocation12 + $0x8] sm:$0xff]   ;;  %v1819_v2 = vmov 0.0   ;;  %v1568_v3 = vld [vmem:[#allocation12 + $0x10] sm:$0xff]   ;;  %vm1820_vm0 = vmmov 0   ;;  %s148_s7 = sld [smem:[#allocation23]] }
  0xa0   :  { %1382 = vmatprep.subr.bf16.mxu1 %v1819_v2  ;;  %1358 = vmatprep.subr.bf16.mxu0 %v1566_v0  ;;  %v1569_v4 = vld [vmem:[#allocation12 + $0x18] sm:$0xff]   ;;  %v1574_v5 = vld [vmem:[#allocation8] sm:$0xff]   ;;  %v2016_v8 = vld [vmem:[#allocation15 + $0x8] sm:$0xff]   ;;  %s1821_s8 = smov 0.0   ;;  %s1822_s15 = smov 1.0  }
  0xa1   :  { %1359 = vmatpush3.bf16.msra.mxu0 %v1566_v0  ;;  %1374 = vmatprep.mubr.bf16.mxu0 %v1574_v5  ;;  %v1570_v6 = vld [vmem:[#allocation12 + $0x20] sm:$0xff]   ;;  %v1571_v9 = vld [vmem:[#allocation12 + $0x28] sm:$0xff]   ;;  %v2019_v10 = vld [vmem:[#allocation15 + $0x10] sm:$0xff]   ;;  %v1823_v33 = vmov 1.0|1.0   ;;  %s1179_s25 = sld [smem:[#allocation23 + $0x1]] }
  0xa2   :  { %1360 = vmatprep.subr.bf16.mxu0 %v1567_v1  ;;  %v2013_v7 = vld [vmem:[#allocation15] sm:$0xff]   ;;  %v1572_v11 = vld [vmem:[#allocation12 + $0x30] sm:$0xff]   ;;  %v2024_v12 = vld [vmem:[#allocation15 + $0x18] sm:$0xff]   ;;  %1398 = vmatprep.mubr.msk.bf16.mxu1 %vm1820_vm0, %v1819_v2 }
  0xa3   :  { %1383 = vmatpush3.bf16.msra.mxu1 %v2013_v7  ;;  %v1573_v13 = vld [vmem:[#allocation12 + $0x38] sm:$0xff]   ;;  %v2028_v14 = vld [vmem:[#allocation15 + $0x20] sm:$0xff]   ;;  %v2032_v16 = vld [vmem:[#allocation15 + $0x28] sm:$0xff]  }
  0xa4   :  { %1384 = vmatprep.subr.bf16.mxu1 %v1819_v2  ;;  %v1575_v15 = vld [vmem:[#allocation8 + $0x8] sm:$0xff]   ;;  %v1576_v17 = vld [vmem:[#allocation8 + $0x10] sm:$0xff]   ;;  %v1577_v18 = vld [vmem:[#allocation8 + $0x18] sm:$0xff]  }
  0xa5   :  { %1361 = vmatpush3.bf16.msra.mxu0 %v1567_v1  ;;  %v2050_v19 = vld [vmem:[#allocation15 + $0x30] sm:$0xff]   ;;  %v2056_v20 = vld [vmem:[#allocation15 + $0x38] sm:$0xff]   ;;  %s149_s11 = smax.f32 %s1821_s8, %s148_s7 }
  0xa6   :  { %1362 = vmatprep.subr.bf16.mxu0 %v1568_v3  ;;  %s150_s0 = smin.f32 %s1822_s15, %s149_s11  ;;  %v1180_v22 = vld [vmem:[#allocation14] ss:$0 sm:$0xff] }
  0xa7   :  { %1385 = vmatpush3.bf16.msra.mxu1 %v2016_v8  ;;  %v2068_v21 = vstv %s150_s0  ;;  %s152_s4 = smax.f32 %s1821_s8, %s1179_s25 }
  0xa8   :  { %1386 = vmatprep.subr.bf16.mxu1 %v1819_v2  ;;  %v362_v24 = vmul.f32 0.0, %v2068_v21  ;;  %s153_s29 = smin.f32 %s1822_s15, %s152_s4 }
  0xa9   :  { %1363 = vmatpush3.bf16.msra.mxu0 %v1568_v3 }
  0xaa   :  { %1364 = vmatprep.subr.bf16.mxu0 %v1569_v4 }
  0xab   :  { %1387 = vmatpush3.bf16.msra.mxu1 %v2019_v10 }
  0xac   :  { %1388 = vmatprep.subr.bf16.mxu1 %v1819_v2 }
  0xad   :  { %1365 = vmatpush3.bf16.msra.mxu0 %v1569_v4 }
  0xae   :  { %1366 = vmatprep.subr.bf16.mxu0 %v1570_v6 }
  0xaf   :  { %1389 = vmatpush3.bf16.msra.mxu1 %v2024_v12 }
  0xb0   :  { %1390 = vmatprep.subr.bf16.mxu1 %v1819_v2 }
  0xb1   :  { %1367 = vmatpush3.bf16.msra.mxu0 %v1570_v6 }
  0xb2   :  { %1368 = vmatprep.subr.bf16.mxu0 %v1571_v9 }
  0xb3   :  { %1391 = vmatpush3.bf16.msra.mxu1 %v2028_v14 }
  0xb4   :  { %1392 = vmatprep.subr.bf16.mxu1 %v1819_v2 }
  0xb5   :  { %1369 = vmatpush3.bf16.msra.mxu0 %v1571_v9 }
  0xb6   :  { %1370 = vmatprep.subr.bf16.mxu0 %v1572_v11 }
  0xb7   :  { %1393 = vmatpush3.bf16.msra.mxu1 %v2032_v16 }
  0xb8   :  { %1394 = vmatprep.subr.bf16.mxu1 %v1819_v2 }
  0xb9   :  { %1371 = vmatpush3.bf16.msra.mxu0 %v1572_v11 }
  0xba   :  { %1372 = vmatprep.subr.bf16.mxu0 %v1573_v13 }
  0xbb   :  { %1395 = vmatpush3.bf16.msra.mxu1 %v2050_v19 }
  0xbc   :  { %1396 = vmatprep.subr.bf16.mxu1 %v1819_v2 }
  0xbd   :  { %1373 = vmatpush3.bf16.msra.mxu0 %v1573_v13 }
  0xbe   :  { %1402 = vmatprep.subr.bf16.mxu0 %v1819_v2 }
  0xbf   :  { %1397 = vmatpush3.bf16.msra.mxu1 %v2056_v20 }
  0xc0   :  { %1375 = vmatmul.mubr.bf16.vlgmr.msra.gmra.mrb[0].mxu0 %v1575_v15  ;;  %1422 = vmatprep.subr.bf16.mxu1 %v1819_v2 }
  0xc1   :  { %1378 = vmatprep.mubr.bf16.mxu0 %v1576_v17  ;;  %1403 = vmatpush3.bf16.msra.mxu0 %v2013_v7 }
  0xc2   :  { %1404 = vmatprep.subr.bf16.mxu0 %v1819_v2 }
  0xc5   :  { %1405 = vmatpush3.bf16.msra.mxu0 %v2016_v8 }
  0xc6   :  { %1406 = vmatprep.subr.bf16.mxu0 %v1819_v2 }
  0xc8   :  { %1379 = vmatmul.mubr.bf16.gmra.mrb[4].mxu0 %v1577_v18 }
  0xc9   :  { %1407 = vmatpush3.bf16.msra.mxu0 %v2019_v10  ;;  %1418 = vmatprep.mubr.msk.bf16.mxu0 %vm1820_vm0, %v1819_v2 }
  0xca   :  { %1408 = vmatprep.subr.bf16.mxu0 %v1819_v2 }
  0xcd   :  { %1409 = vmatpush3.bf16.msra.mxu0 %v2024_v12 }
  0xce   :  { %1410 = vmatprep.subr.bf16.mxu0 %v1819_v2 }
  0xd1   :  { %1411 = vmatpush3.bf16.msra.mxu0 %v2028_v14 }
  0xd2   :  { %1412 = vmatprep.subr.bf16.mxu0 %v1819_v2 }
  0xd5   :  { %1413 = vmatpush3.bf16.msra.mxu0 %v2032_v16 }
  0xd6   :  { %1414 = vmatprep.subr.bf16.mxu0 %v1819_v2 }
  0xd9   :  { %1415 = vmatpush3.bf16.msra.mxu0 %v2050_v19 }
  0xda   :  { %1416 = vmatprep.subr.bf16.mxu0 %v1819_v2 }
  0xdd   :  { %1417 = vmatpush3.bf16.msra.mxu0 %v2056_v20 }
  0xde   :  { %1442 = vmatprep.subr.bf16.mxu0 %v1819_v2 }
 0x193   :  { %v1376_v23 = vpop.f32.mrb[0].mxu0 }
 0x194   :  { %v300_v25 = vpop.f32.mrb[1].mxu0  ;;  %v309_v42 = vadd.f32 %v1376_v23, %v1180_v22 }
 0x195   :  { %v301_v26 = vadd.f32 %v1180_v22, %v300_v25  ;;  %v1377_v27 = vpop.f32.mrb[2].mxu0 }
 0x196   :  { %v303_v28 = vpop.f32.mrb[3].mxu0  ;;  %v312_v48 = vadd.f32 %v1377_v27, %v1180_v22 }
 0x197   :  { %v363_v29 = vadd.f32 %v362_v24, %v301_v26  ;;  %v304_v30 = vadd.f32 %v1180_v22, %v303_v28 }
 0x199   :  { %vm366_vm1 = vcmp.gt.f32.partialorder %v363_v29, 1.0  ;;  %v484_v31 = vmul.f32 %v363_v29, %v2068_v21  ;;  %v2259_v29 = vld [vmem:[#allocation18] ss:$0 sm:$0xff] }
 0x19a   :  { %vm1204_vm2 = vmpackc.low %vm366_vm1, %vm366_vm1  ;;  %v1208_v35 = vsel %vm366_vm1, 1.0, %v1819_v2 }
 0x19b   :  { %v485_v32 = vadd.f32 %v484_v31, %v304_v30  ;;  %1399 = vmatmul.mubr.msk.bf16.vlgmr.msra.gmra.mrb[0].mxu1 %vm1204_vm2, %v1823_v33  ;;  %v1380_v34 = vpop.f32.mrb[4].mxu0 }
 0x19c   :  { %1423 = vmatpush3.bf16.msra.mxu1 %v2013_v7  ;;  %v325_v36 = vadd.f32 %v1380_v34, %v1180_v22  ;;  %v316_v37 = vpop.f32.mrb[5].mxu0  ;;  %1438 = vmatprep.mubr.msk.bf16.mxu1 %vm1820_vm0, %v1819_v2 }
 0x19d   :  { %v486_v38 = vsub.f32 %v485_v32, %v1208_v35  ;;  %1424 = vmatprep.subr.bf16.mxu1 %v1819_v2  ;;  %v1381_v39 = vpop.f32.mrb[6].mxu0  ;;  %v317_v52 = vadd.f32 %v1180_v22, %v316_v37 }
 0x19e   :  { %v2078_v40 = vadd.f32 %v1381_v39, %v1180_v22  ;;  %v319_v41 = vpop.f32.mrb[7].mxu0 }
 0x19f   :  { %vm488_vm3 = vcmp.gt.f32.partialorder %v486_v38, 1.0  ;;  %v552_v43 = vmul.f32 %v486_v38, %v2068_v21  ;;  %v320_v44 = vadd.f32 %v1180_v22, %v319_v41 }
 0x1a0   :  { %vm1210_vm4 = vmpackc.low %vm488_vm3, %vm488_vm3  ;;  %1425 = vmatpush3.bf16.msra.mxu1 %v2016_v8  ;;  %v1214_v46 = vsel %vm488_vm3, 1.0, %v1819_v2 }
 0x1a1   :  { %v553_v45 = vadd.f32 %v552_v43, %v309_v42  ;;  %1419 = vmatmul.mubr.msk.bf16.vlgmr.msra.gmra.mrb[8].mxu0 %vm1210_vm4, %v1823_v33  ;;  %1426 = vmatprep.subr.bf16.mxu1 %v1819_v2 }
 0x1a2   :  { %1443 = vmatpush3.bf16.msra.mxu0 %v2013_v7  ;;  %1458 = vmatprep.mubr.msk.bf16.mxu0 %vm1820_vm0, %v1819_v2 }
 0x1a3   :  { %v554_v47 = vsub.f32 %v553_v45, %v1214_v46  ;;  %1444 = vmatprep.subr.bf16.mxu0 %v1819_v2 }
 0x1a4   :  { %1427 = vmatpush3.bf16.msra.mxu1 %v2019_v10 }
 0x1a5   :  { %1428 = vmatprep.subr.bf16.mxu1 %v1819_v2  ;;  %vm556_vm5 = vcmp.gt.f32.partialorder %v554_v47, 1.0  ;;  %v620_v49 = vmul.f32 %v554_v47, %v2068_v21 }
 0x1a6   :  { %1445 = vmatpush3.bf16.msra.mxu0 %v2016_v8  ;;  %v1220_v51 = vsel %vm556_vm5, 1.0, %v1819_v2  ;;  %vm1216_vm9 = vmpackc.low %vm556_vm5, %vm556_vm5 }
 0x1a7   :  { %1446 = vmatprep.subr.bf16.mxu0 %v1819_v2  ;;  %v621_v50 = vadd.f32 %v620_v49, %v312_v48 }
 0x1a8   :  { %1429 = vmatpush3.bf16.msra.mxu1 %v2024_v12 }
 0x1a9   :  { %v622_v53 = vsub.f32 %v621_v50, %v1220_v51  ;;  %1430 = vmatprep.subr.bf16.mxu1 %v1819_v2 }
 0x1aa   :  { %1447 = vmatpush3.bf16.msra.mxu0 %v2019_v10 }
 0x1ab   :  { %vm624_vm6 = vcmp.gt.f32.partialorder %v622_v53, 1.0  ;;  %v688_v54 = vmul.f32 %v622_v53, %v2068_v21  ;;  %1448 = vmatprep.subr.bf16.mxu0 %v1819_v2 }
 0x1ac   :  { %1431 = vmatpush3.bf16.msra.mxu1 %v2028_v14  ;;  %v1226_v56 = vsel %vm624_vm6, 1.0, %v1819_v2  ;;  %vm1222_vm11 = vmpackc.low %vm624_vm6, %vm624_vm6 }
 0x1ad   :  { %v689_v55 = vadd.f32 %v688_v54, %v317_v52  ;;  %1432 = vmatprep.subr.bf16.mxu1 %v1819_v2 }
 0x1ae   :  { %1449 = vmatpush3.bf16.msra.mxu0 %v2024_v12 }
 0x1af   :  { %v2106_v57 = vsub.f32 %v689_v55, %v1226_v56  ;;  %1450 = vmatprep.subr.bf16.mxu0 %v1819_v2 }
 0x1b0   :  { %1433 = vmatpush3.bf16.msra.mxu1 %v2032_v16 }
 0x1b1   :  { %vm692_vm7 = vcmp.gt.f32.partialorder %v2106_v57, 1.0  ;;  %v756_v58 = vmul.f32 %v2106_v57, %v2068_v21  ;;  %1434 = vmatprep.subr.bf16.mxu1 %v1819_v2 }
 0x1b2   :  { %1451 = vmatpush3.bf16.msra.mxu0 %v2028_v14  ;;  %v1232_v60 = vsel %vm692_vm7, 1.0, %v1819_v2  ;;  %vm1228_vm12 = vmpackc.low %vm692_vm7, %vm692_vm7 }
 0x1b3   :  { %v757_v59 = vadd.f32 %v756_v58, %v320_v44  ;;  %1452 = vmatprep.subr.bf16.mxu0 %v1819_v2 }
 0x1b4   :  { %1435 = vmatpush3.bf16.msra.mxu1 %v2050_v19 }
 0x1b5   :  { %v2120_v61 = vsub.f32 %v757_v59, %v1232_v60  ;;  %1436 = vmatprep.subr.bf16.mxu1 %v1819_v2 }
 0x1b6   :  { %1453 = vmatpush3.bf16.msra.mxu0 %v2032_v16 }
 0x1b7   :  { %vm760_vm8 = vcmp.gt.f32.partialorder %v2120_v61, 1.0  ;;  %v824_v62 = vmul.f32 %v2120_v61, %v2068_v21  ;;  %1454 = vmatprep.subr.bf16.mxu0 %v1819_v2 }
 0x1b8   :  { %1437 = vmatpush3.bf16.msra.mxu1 %v2056_v20  ;;  %v1238_v0 = vsel %vm760_vm8, 1.0, %v1819_v2  ;;  %vm1234_vm13 = vmpackc.low %vm760_vm8, %vm760_vm8 }
 0x1b9   :  { %v825_v63 = vadd.f32 %v824_v62, %v325_v36  ;;  %1462 = vmatprep.subr.bf16.mxu1 %v1819_v2 }
 0x1ba   :  { %1455 = vmatpush3.bf16.msra.mxu0 %v2050_v19 }
 0x1bb   :  { %v2136_v1 = vsub.f32 %v825_v63, %v1238_v0  ;;  %1439 = vmatmul.mubr.msk.bf16.vlgmr.msra.gmra.mrb[4].mxu1 %vm1216_vm9, %v1823_v33  ;;  %1456 = vmatprep.subr.bf16.mxu0 %v1819_v2  ;;  %vm161_vm9 = vcmask 57344  }
 0x1bc   :  { %1463 = vmatpush3.bf16.msra.mxu1 %v2013_v7  ;;  %1478 = vmatprep.mubr.msk.bf16.mxu1 %vm1820_vm0, %v1819_v2  ;;  %162 = vst.msk [vmem:[#allocation6] sm:$0x1] %vm161_vm9, %v1819_v2 }
 0x1bd   :  { %1464 = vmatprep.subr.bf16.mxu1 %v1819_v2  ;;  %vm828_vm10 = vcmp.gt.f32.partialorder %v2136_v1, 1.0  ;;  %v892_v3 = vmul.f32 %v2136_v1, %v2068_v21 }
 0x1be   :  { %1457 = vmatpush3.bf16.msra.mxu0 %v2056_v20  ;;  %v2158_v5 = vsel %vm828_vm10, 1.0, %v1819_v2  ;;  %vm1240_vm14 = vmpackc.low %vm828_vm10, %vm828_vm10  ;;  %vm1067_vm10 = vcmask 1041409  }
 0x1bf   :  { %1482 = vmatprep.subr.bf16.mxu0 %v1819_v2  ;;  %v2150_v4 = vadd.f32 %v892_v3, %v2078_v40 }
 0x1c0   :  { %1465 = vmatpush3.bf16.msra.mxu1 %v2016_v8 }
 0x1c1   :  { %1459 = vmatmul.mubr.msk.bf16.vlgmr.msra.gmra.mrb[12].mxu0 %vm1222_vm11, %v1823_v33  ;;  %1466 = vmatprep.subr.bf16.mxu1 %v1819_v2  ;;  %v894_v6 = vsub.f32 %v2150_v4, %v2158_v5  ;;  %vm1069_vm11 = vcmask 1042434  }
 0x1c2   :  { %1483 = vmatpush3.bf16.msra.mxu0 %v2013_v7  ;;  %1498 = vmatprep.mubr.msk.bf16.mxu0 %vm1820_vm0, %v1819_v2 }
 0x1c3   :  { %1484 = vmatprep.subr.bf16.mxu0 %v1819_v2  ;;  %vm896_vm15 = vcmp.gt.f32.partialorder %v894_v6, 1.0 }
 0x1c4   :  { %1467 = vmatpush3.bf16.msra.mxu1 %v2019_v10  ;;  %vm1246_vm1 = vmpackc.low %vm896_vm15, %vm896_vm15  ;;  %vm1077_vm15 = vcmask 1046534  }
 0x1c5   :  { %1468 = vmatprep.subr.bf16.mxu1 %v1819_v2 }
 0x1c6   :  { %1485 = vmatpush3.bf16.msra.mxu0 %v2016_v8 }
 0x1c7   :  { %1486 = vmatprep.subr.bf16.mxu0 %v1819_v2 }
 0x1c8   :  { %1469 = vmatpush3.bf16.msra.mxu1 %v2024_v12 }
 0x1c9   :  { %1470 = vmatprep.subr.bf16.mxu1 %v1819_v2 }
 0x1ca   :  { %1487 = vmatpush3.bf16.msra.mxu0 %v2019_v10 }
 0x1cb   :  { %1488 = vmatprep.subr.bf16.mxu0 %v1819_v2 }
 0x1cc   :  { %1471 = vmatpush3.bf16.msra.mxu1 %v2028_v14 }
 0x1cd   :  { %1472 = vmatprep.subr.bf16.mxu1 %v1819_v2 }
 0x1ce   :  { %1489 = vmatpush3.bf16.msra.mxu0 %v2024_v12 }
 0x1cf   :  { %1490 = vmatprep.subr.bf16.mxu0 %v1819_v2 }
 0x1d0   :  { %1473 = vmatpush3.bf16.msra.mxu1 %v2032_v16 }
 0x1d1   :  { %1474 = vmatprep.subr.bf16.mxu1 %v1819_v2 }
 0x1d2   :  { %1491 = vmatpush3.bf16.msra.mxu0 %v2028_v14 }
 0x1d3   :  { %1492 = vmatprep.subr.bf16.mxu0 %v1819_v2 }
 0x1d4   :  { %1475 = vmatpush3.bf16.msra.mxu1 %v2050_v19 }
 0x1d5   :  { %1476 = vmatprep.subr.bf16.mxu1 %v1819_v2 }
 0x1d6   :  { %1493 = vmatpush3.bf16.msra.mxu0 %v2032_v16 }
 0x1d7   :  { %1494 = vmatprep.subr.bf16.mxu0 %v1819_v2 }
 0x1d8   :  { %1477 = vmatpush3.bf16.msra.mxu1 %v2056_v20 }
 0x1d9   :  { %1502 = vmatprep.subr.bf16.mxu1 %v1819_v2 }
 0x1da   :  { %1495 = vmatpush3.bf16.msra.mxu0 %v2050_v19 }
 0x1db   :  { %1479 = vmatmul.mubr.msk.bf16.vlgmr.msra.gmra.mrb[8].mxu1 %vm1228_vm12, %v1823_v33  ;;  %1496 = vmatprep.subr.bf16.mxu0 %v1819_v2  ;;  %vm1071_vm12 = vcmask 1043459  }
 0x1dc   :  { %1503 = vmatpush3.bf16.msra.mxu1 %v2013_v7  ;;  %1518 = vmatprep.mubr.msk.bf16.mxu1 %vm1820_vm0, %v1819_v2 }
 0x1dd   :  { %1504 = vmatprep.subr.bf16.mxu1 %v1819_v2 }
 0x1de   :  { %1497 = vmatpush3.bf16.msra.mxu0 %v2056_v20 }
 0x1df   :  { %1522 = vmatprep.subr.bf16.mxu0 %v1819_v2 }
 0x1e0   :  { %1505 = vmatpush3.bf16.msra.mxu1 %v2016_v8 }
 0x1e1   :  { %1499 = vmatmul.mubr.msk.bf16.vlgmr.msra.gmra.mrb[16].mxu0 %vm1234_vm13, %v1823_v33  ;;  %1506 = vmatprep.subr.bf16.mxu1 %v1819_v2  ;;  %vm1073_vm13 = vcmask 1044484  }
 0x1e2   :  { %1523 = vmatpush3.bf16.msra.mxu0 %v2013_v7  ;;  %1538 = vmatprep.mubr.msk.bf16.mxu0 %vm1820_vm0, %v1819_v2  ;;  %v2249_v7 = vstv %s153_s29 }
 0x1e3   :  { %1524 = vmatprep.subr.bf16.mxu0 %v1819_v2  ;;  %v469_v9 = vmul.f32 0.0, %v2249_v7 }
 0x1e4   :  { %1507 = vmatpush3.bf16.msra.mxu1 %v2019_v10 }
 0x1e5   :  { %1508 = vmatprep.subr.bf16.mxu1 %v1819_v2 }
 0x1e6   :  { %1525 = vmatpush3.bf16.msra.mxu0 %v2016_v8  ;;  %v2251_v8 = vld [vmem:[#allocation17] ss:$0 sm:$0xff] }
 0x1e7   :  { %1526 = vmatprep.subr.bf16.mxu0 %v1819_v2 }
 0x1e8   :  { %1509 = vmatpush3.bf16.msra.mxu1 %v2024_v12 }
 0x1e9   :  { %1510 = vmatprep.subr.bf16.mxu1 %v1819_v2 }
 0x1ea   :  { %1527 = vmatpush3.bf16.msra.mxu0 %v2019_v10 }
 0x1eb   :  { %1528 = vmatprep.subr.bf16.mxu0 %v1819_v2 }
 0x1ec   :  { %1511 = vmatpush3.bf16.msra.mxu1 %v2028_v14 }
 0x1ed   :  { %1512 = vmatprep.subr.bf16.mxu1 %v1819_v2 }
 0x1ee   :  { %1529 = vmatpush3.bf16.msra.mxu0 %v2024_v12 }
 0x1ef   :  { %1530 = vmatprep.subr.bf16.mxu0 %v1819_v2 }
 0x1f0   :  { %1513 = vmatpush3.bf16.msra.mxu1 %v2032_v16 }
 0x1f1   :  { %1514 = vmatprep.subr.bf16.mxu1 %v1819_v2 }
 0x1f2   :  { %1531 = vmatpush3.bf16.msra.mxu0 %v2028_v14 }
 0x1f3   :  { %1532 = vmatprep.subr.bf16.mxu0 %v1819_v2 }
 0x1f4   :  { %1515 = vmatpush3.bf16.msra.mxu1 %v2050_v19 }
 0x1f5   :  { %1516 = vmatprep.subr.bf16.mxu1 %v1819_v2 }
 0x1f6   :  { %1533 = vmatpush3.bf16.msra.mxu0 %v2032_v16 }
 0x1f7   :  { %1534 = vmatprep.subr.bf16.mxu0 %v1819_v2 }
 0x1f8   :  { %1517 = vmatpush3.bf16.msra.mxu1 %v2056_v20 }
 0x1f9   :  { %1542 = vmatprep.subr.mxu1 %v1819_v2 }
 0x1fa   :  { %1535 = vmatpush3.bf16.msra.mxu0 %v2050_v19 }
 0x1fb   :  { %1519 = vmatmul.mubr.msk.bf16.vlgmr.msra.gmra.mrb[12].mxu1 %vm1240_vm14, %v1823_v33  ;;  %1536 = vmatprep.subr.bf16.mxu0 %v1819_v2  ;;  %vm1075_vm14 = vcmask 1045509  }
 0x1fc   :  { %1544 = vmatprep.mubr.msk.f32.mxu1 %vm1820_vm0, %v1819_v2 }
 0x1fe   :  { %1537 = vmatpush3.bf16.msra.mxu0 %v2056_v20 }
 0x201   :  { %1539 = vmatmul.mubr.msk.bf16.vlgmr.msra.gmra.mrb[20].mxu0 %vm1246_vm1, %v1823_v33  ;;  %vm1079_vm1 = vcmask 1047559  }
 0x26e   :  { %v458_v10 = vpop.f32.mrb[0].mxu1 }
 0x26f   :  { %v459_v11 = vadd.f32 %v2251_v8, %v458_v10  ;;  %v1400_v12 = vpop.f32.mrb[1].mxu1 }
 0x270   :  { %v461_v13 = vpop.f32.mrb[2].mxu1 }
 0x271   :  { %v470_v14 = vadd.f32 %v469_v9, %v459_v11  ;;  %v1401_v15 = vpop.f32.mrb[3].mxu1 }
 0x273   :  { %vm473_vm0 = vcmp.gt.f32.partialorder %v470_v14, 1.0  ;;  %v536_v20 = vmul.f32 %v470_v14, %v2249_v7 }
 0x274   :  { %v1207_v16 = vsel %vm473_vm0, 1.0, %v1819_v2  ;;  %v526_v17 = vpop.f32.mrb[8].mxu0  ;;  %vm1082_vm0 = vcmask 64512  }
 0x275   :  { %v476_v18 = vpack.c.bf16 %v1207_v16, %v1207_v16  ;;  %v527_v19 = vadd.f32 %v2251_v8, %v526_v17  ;;  %v1420_v21 = vpop.f32.mrb[9].mxu0 }
 0x276   :  { %v529_v22 = vpop.f32.mrb[10].mxu0 }
 0x277   :  { %477 = vst [vmem:[#allocation3] sm:$0xf] %v476_v18  ;;  %v537_v23 = vadd.f32 %v536_v20, %v527_v19  ;;  %v1421_v24 = vpop.f32.mrb[11].mxu0 }
 0x279   :  { %v538_v25 = vsub.f32 %v537_v23, %v1207_v16 }
 0x27b   :  { %vm540_vm2 = vcmp.gt.f32.partialorder %v538_v25, 1.0  ;;  %v604_v36 = vmul.f32 %v538_v25, %v2249_v7 }
 0x27c   :  { %v1213_v26 = vsel %vm540_vm2, 1.0, %v1819_v2  ;;  %vm1157_vm2 = vcmask 64519  }
 0x27d   :  { %v543_v27 = vpack.c.bf16 %v1213_v26, %v1213_v26 }
 0x27f   :  { %545 = vst [vmem:[#allocation3 + $0x4] sm:$0xf] %v543_v27 }
 0x286   :  { %v1254_v28 = vld [vmem:[#allocation3] sm:$0xff]  }
 0x287   :  { %v1255_v30 = vunpack.c.l.bf16 %v1254_v28  ;;  %v1256_v32 = vunpack.c.h.bf16 %v1254_v28 }
 0x289   :  { %v977_v31 = vmul.f32 %v1255_v30, %v2259_v29  ;;  %v978_v33 = vmul.f32 %v1256_v32, %v2259_v29 }
 0x28b   :  { %985 = vadd.xlane.f32.xlu0 %v977_v31 }
 0x28e   :  { %v594_v34 = vpop.f32.mrb[4].mxu1 }
 0x28f   :  { %v595_v35 = vadd.f32 %v2251_v8, %v594_v34  ;;  %v1440_v37 = vpop.f32.mrb[5].mxu1  ;;  %987 = vadd.xlane.f32.xlu0 %v978_v33 }
 0x290   :  { %v597_v38 = vpop.f32.mrb[6].mxu1 }
 0x291   :  { %v605_v39 = vadd.f32 %v604_v36, %v595_v35  ;;  %v1441_v40 = vpop.f32.mrb[7].mxu1 }
 0x293   :  { %v606_v41 = vsub.f32 %v605_v39, %v1213_v26 }
 0x294   :  { %v662_v42 = vpop.f32.mrb[12].mxu0 }
 0x295   :  { %vm608_vm3 = vcmp.gt.f32.partialorder %v606_v41, 1.0  ;;  %v663_v43 = vadd.f32 %v2251_v8, %v662_v42  ;;  %v672_v44 = vmul.f32 %v606_v41, %v2249_v7  ;;  %v1460_v45 = vpop.f32.mrb[13].mxu0 }
 0x296   :  { %v1219_v46 = vsel %vm608_vm3, 1.0, %v1819_v2  ;;  %v665_v47 = vpop.f32.mrb[14].mxu0 }
 0x297   :  { %v611_v48 = vpack.c.bf16 %v1219_v46, %v1219_v46  ;;  %v673_v49 = vadd.f32 %v672_v44, %v663_v43  ;;  %v1461_v50 = vpop.f32.mrb[15].mxu0  ;;  %v1011_v47 = vld [vmem:[#allocation21] sm:$0xff] }
 0x299   :  { %613 = vst [vmem:[#allocation3 + $0x8] sm:$0xf] %v611_v48  ;;  %v674_v51 = vsub.f32 %v673_v49, %v1219_v46  ;;  %v1824_v48 = vmov 0  }
 0x29a   :  { %1565 = vset.pattern.permute.xlu0 %v1824_v48 }
 0x29b   :  { %vm676_vm4 = vcmp.gt.f32.partialorder %v674_v51, 1.0  ;;  %v740_v61 = vmul.f32 %v674_v51, %v2249_v7  ;;  %v1033_v51 = vlaneseq }
 0x29c   :  { %v1225_v52 = vsel %vm676_vm4, 1.0, %v1819_v2 }
 0x29d   :  { %v679_v53 = vpack.c.bf16 %v1225_v52, %v1225_v52 }
 0x29f   :  { %681 = vst [vmem:[#allocation3 + $0xc] sm:$0xf] %v679_v53  ;;  %v1034_v53 = vand.u32 127, %v1033_v51 }
 0x2a6   :  { %v1269_v54 = vld [vmem:[#allocation3 + $0x8] sm:$0xff]  }
 0x2a7   :  { %v1259_v55 = vunpack.c.l.bf16 %v1269_v54  ;;  %v1260_v57 = vunpack.c.h.bf16 %v1269_v54  ;;  %v1036_v54 = vshrl.u32 %v1033_v51, 7 }
 0x2a9   :  { %v979_v56 = vmul.f32 %v1259_v55, %v2259_v29  ;;  %v980_v58 = vmul.f32 %v1260_v57, %v2259_v29  ;;  %v1001_v55 = vstv %s2312_s9  ;;  %s1825_s9 = smov [#allocation24]  }
 0x2aa   :  { %s1165_s17 = sshll.u32 %s1825_s9, 4  ;;  %s1166_s17 = int_to_ptr.vmem [resolvable:$true] %s1165_s17 }
 0x2ab   :  { %989 = vadd.xlane.f32.xlu1 %v979_v56  ;;  %s1772_s18 = scalar_lea.vmem %s1166_s17, 128  ;;  %p1777_p12 = scmp.lt.s32.totalorder %s1166_s17, %s1166_s17 }
 0x2ac   :  { %p1773_p11 = scmp.ne.s32.totalorder %s1166_s17, %s1772_s18  ;;  %p1778_p13 = scmp.lt.s32.totalorder %s1772_s18, %s1772_s18 }
 0x2ae   :  { %v730_v59 = vpop.f32.mrb[8].mxu1  ;;  %p1779_p0 = por %p1778_p13, %p1777_p12 }
 0x2af   :  { %v731_v60 = vadd.f32 %v2251_v8, %v730_v59  ;;  %991 = vadd.xlane.f32.xlu1 %v980_v58  ;;  %v1480_v62 = vpop.f32.mrb[9].mxu1  ;;  %v1037_v59 = vsub.s32 %v1034_v53, %v1036_v54 }
 0x2b0   :  { %v733_v63 = vpop.f32.mrb[10].mxu1  ;;  %p1780_p1 = pnand %p1779_p0, %p1773_p11 }
 0x2b1   :  { %v741_v0 = vadd.f32 %v740_v61, %v731_v60  ;;  %v1481_v1 = vpop.f32.mrb[11].mxu1 }
 0x2b3   :  { %v742_v3 = vsub.f32 %v741_v0, %v1225_v52 }
 0x2b4   :  { %v798_v4 = vpop.f32.mrb[16].mxu0 }
 0x2b5   :  { %vm744_vm5 = vcmp.gt.f32.partialorder %v742_v3, 1.0  ;;  %v799_v5 = vadd.f32 %v2251_v8, %v798_v4  ;;  %v808_v6 = vmul.f32 %v742_v3, %v2249_v7  ;;  %v1500_v9 = vpop.f32.mrb[17].mxu0 }
 0x2b6   :  { %v1231_v10 = vsel %vm744_vm5, 1.0, %v1819_v2  ;;  %v801_v11 = vpop.f32.mrb[18].mxu0 }
 0x2b7   :  { %v747_v12 = vpack.c.bf16 %v1231_v10, %v1231_v10  ;;  %v809_v13 = vadd.f32 %v808_v6, %v799_v5  ;;  %v1501_v14 = vpop.f32.mrb[19].mxu0 }
 0x2b9   :  { %749 = vst [vmem:[#allocation3 + $0x10] sm:$0xf] %v747_v12  ;;  %v810_v15 = vsub.f32 %v809_v13, %v1231_v10 }
 0x2bb   :  { %vm812_vm6 = vcmp.gt.f32.partialorder %v810_v15, 1.0  ;;  %v876_v25 = vmul.f32 %v810_v15, %v2249_v7 }
 0x2bc   :  { %v1237_v16 = vsel %vm812_vm6, 1.0, %v1819_v2 }
 0x2bd   :  { %v815_v17 = vpack.c.bf16 %v1237_v16, %v1237_v16 }
 0x2bf   :  { %817 = vst [vmem:[#allocation3 + $0x14] sm:$0xf] %v815_v17 }
 0x2c6   :  { %v1270_v18 = vld [vmem:[#allocation3 + $0x10] sm:$0xff]  }
 0x2c7   :  { %v1264_v19 = vunpack.c.h.bf16 %v1270_v18  ;;  %v1263_v20 = vunpack.c.l.bf16 %v1270_v18 }
 0x2c9   :  { %v982_v21 = vmul.f32 %v1264_v19, %v2259_v29  ;;  %v981_v22 = vmul.f32 %v1263_v20, %v2259_v29 }
 0x2cb   :  { %995 = vadd.xlane.f32.xlu1 %v982_v21  ;;  %993 = vadd.xlane.f32.xlu0 %v981_v22  ;;  %v1010_v21 = vld [vmem:[#allocation20] sm:$0xff] }
 0x2ce   :  { %v866_v23 = vpop.f32.mrb[12].mxu1 }
 0x2cf   :  { %v867_v24 = vadd.f32 %v2251_v8, %v866_v23  ;;  %v1520_v26 = vpop.f32.mrb[13].mxu1  ;;  %v1251_v23 = vld [vmem:[#allocation6] ss:$0 sm:$0xff] }
 0x2d0   :  { %v869_v27 = vpop.f32.mrb[14].mxu1 }
 0x2d1   :  { %v877_v28 = vadd.f32 %v876_v25, %v867_v24  ;;  %v1521_v30 = vpop.f32.mrb[15].mxu1 }
 0x2d3   :  { %v878_v31 = vsub.f32 %v877_v28, %v1237_v16 }
 0x2d4   :  { %v934_v32 = vpop.f32.mrb[20].mxu0 }
 0x2d5   :  { %vm880_vm7 = vcmp.gt.f32.partialorder %v878_v31, 1.0  ;;  %v935_v33 = vadd.f32 %v2251_v8, %v934_v32  ;;  %v944_v34 = vmul.f32 %v878_v31, %v2249_v7  ;;  %v1540_v35 = vpop.f32.mrb[21].mxu0 }
 0x2d6   :  { %v1243_v36 = vsel %vm880_vm7, 1.0, %v1819_v2  ;;  %v937_v37 = vpop.f32.mrb[22].mxu0 }
 0x2d7   :  { %v883_v38 = vpack.c.bf16 %v1243_v36, %v1243_v36  ;;  %v945_v39 = vadd.f32 %v944_v34, %v935_v33  ;;  %v1541_v40 = vpop.f32.mrb[23].mxu0 }
 0x2d9   :  { %885 = vst [vmem:[#allocation3 + $0x18] sm:$0xf] %v883_v38  ;;  %v946_v41 = vsub.f32 %v945_v39, %v1243_v36 }
 0x2db   :  { %vm948_vm8 = vcmp.gt.f32.partialorder %v946_v41, 1.0 }
 0x2dc   :  { %v1249_v42 = vsel %vm948_vm8, 1.0, %v1819_v2 }
 0x2dd   :  { %v951_v43 = vpack.c.bf16 %v1249_v42, %v1249_v42 }
 0x2df   :  { %953 = vst [vmem:[#allocation3 + $0x1c] sm:$0xf] %v951_v43 }
 0x2e6   :  { %v1271_v44 = vld [vmem:[#allocation3 + $0x18] sm:$0xff]  }
 0x2e7   :  { %v1268_v45 = vunpack.c.h.bf16 %v1271_v44  ;;  %v1267_v46 = vunpack.c.l.bf16 %v1271_v44 }
 0x2e9   :  { %v984_v8 = vmul.f32 %v1268_v45, %v2259_v29  ;;  %v983_v7 = vmul.f32 %v1267_v46, %v2259_v29 }
 0x2eb   :  { %999 = vadd.xlane.f32.xlu1 %v984_v8  ;;  %997 = vadd.xlane.f32.xlu0 %v983_v7 }
 0x301   :  { %1015 = vperm.xlu0 %1565, %v1011_v47  }
 0x318   :  { %v986_v49 = vpop.xlane.xlu0 %985 }
 0x319   :  { %v1002_v60 = vadd.f32 %v1001_v55, %v986_v49 }
 0x31b   :  { %v1038_v1 = vrot.slane %v1002_v60, %v1037_v59 }
 0x31c   :  { %v988_v52 = vpop.xlane.xlu0 %987 }
 0x31d   :  { %v1003_v56 = vadd.f32 %v1001_v55, %v988_v52 }
 0x31f   :  { %v1042_v63 = vrot.slane %v1003_v56, %v1037_v59 }
 0x321   :  { %v1068_v6 = vsel %vm1067_vm10, %v1042_v63, %v1038_v1 }
 0x338   :  { %v990_v50 = vpop.xlane.xlu1 %989 }
 0x339   :  { %v1004_v58 = vadd.f32 %v1001_v55, %v990_v50 }
 0x33b   :  { %v1046_v0 = vrot.slane %v1004_v58, %v1037_v59 }
 0x33c   :  { %v992_v29 = vpop.xlane.xlu1 %991 }
 0x33d   :  { %v1005_v61 = vadd.f32 %v1001_v55, %v992_v29  ;;  %v1070_v9 = vsel %vm1069_vm11, %v1046_v0, %v1068_v6 }
 0x33f   :  { %v1050_v3 = vrot.slane %v1005_v61, %v1037_v59 }
 0x341   :  { %v1072_v10 = vsel %vm1071_vm12, %v1050_v3, %v1070_v9 }
 0x358   :  { %v994_v57 = vpop.xlane.xlu0 %993  ;;  %v996_v62 = vpop.xlane.xlu1 %995 }
 0x359   :  { %v1006_v2 = vadd.f32 %v1001_v55, %v994_v57  ;;  %v1007_v4 = vadd.f32 %v1001_v55, %v996_v62 }
 0x35b   :  { %v1054_v5 = vrot.slane %v1006_v2, %v1037_v59  ;;  %v1058_v11 = vrot.slane %v1007_v4, %v1037_v59 }
 0x35d   :  { %v1074_v14 = vsel %vm1073_vm13, %v1054_v5, %v1072_v10 }
 0x35e   :  { %v1076_v19 = vsel %vm1075_vm14, %v1058_v11, %v1074_v14 }
 0x378   :  { %v1000_v12 = vpop.xlane.xlu1 %999  ;;  %v998_v13 = vpop.xlane.xlu0 %997 }
 0x379   :  { %v1009_v15 = vadd.f32 %v1001_v55, %v1000_v12  ;;  %v1008_v16 = vadd.f32 %v1001_v55, %v998_v13 }
 0x37b   :  { %v1066_v17 = vrot.slane %v1009_v15, %v1037_v59  ;;  %v1062_v18 = vrot.slane %v1008_v16, %v1037_v59 }
 0x37d   :  { %v1078_v20 = vsel %vm1077_vm15, %v1062_v18, %v1076_v19 }
 0x37e   :  { %v1080_v22 = vsel %vm1079_vm1, %v1066_v17, %v1078_v20 }
 0x37f   :  { %1543 = vmatpush3.msra.mxu1 %v1080_v22 }
 0x380   :  { %1545 = vmatmul.mubr.msk.f32.vlgmr.msra.gmra.mrb[16].mxu1 %vm1082_vm0, %v1010_v21  ;;  %v1016_v24 = vpop.permute.xlu0 %1015 }
 0x381   :  { %v1024_v25 = vmul.f32 %v1251_v23, %v1016_v24 }
 0x453   :  { %v1152_v26 = vpop.f32.mrb[16].mxu1 }
 0x454   :  { %v1153_v27 = vadd.f32 %v1152_v26, %v1024_v25  ;;  %v1546_v28 = vpop.f32.mrb[17].mxu1 }
 0x456   :  { %1158 = vst.msk [vmem:[#allocation6 - $0x7] sm:$0x80] %vm1157_vm2, %v1153_v27 }
 0x457   :  { %1156 = vst.msk [vmem:[#allocation24] sm:$0xff] %vm1082_vm0, %v1153_v27 }
 0x458   :  { %1783 = shalt.err (!%p1780_p1)
}
 0x459   :  { %s1784_s19 = scalar_lea.hbm %s2313_s10, 128 }
 0x45a   :  { %p1785_p2 = scmp.ne.s32.totalorder %s2313_s10, %s1784_s19  ;;  %p1788_p3 = scmp.lt.u32.totalorder %s1784_s19, %s2313_s10 }
 0x45c   :  { %p1790_p4 = pnand %p1788_p3, %p1785_p2 }
 0x45e   :  { %1793 = shalt.err (!%p1790_p4)
}
 0x45f   :  { %1168 = dma.vmem_to_hbm [thread:$0]  %s1166_s17, 128, %s2313_s10, [#allocation10]  }
 0x460   :  { %1806 = dma.done.wait [#allocation10], 128  }
 0x461   :  { %1807 = vsyncadd [#allocation10], 4294967168 }
 0x462   :  { %1172 = vsyncpa [#allocation9], 1 }
 0x463   :  { %1173 = vsyncpa [#allocation13], 1 }
 0x464   :  { %1174 = vsyncpa [#allocation16], 1 }
 0x465   :  { %1175 = vsyncpa [#allocation19], 1 }
 0x466   :  { %1176 = vsyncpa [#allocation22], 1 }
 0x467   :  { %1177 = vsyncpa [#allocation10], 1 }
 0x468   :  { %1178 = vsyncpa [#allocation11], 1 }

</bundles_post_ra>
